<compile_context>
chip_gen: v7x
topology: tpu7x:2x2x1
jax: 0.10.0
libtpu: 0.0.40
codegen_flags: <defaults>
</compile_context>

<pallas_src>
import functools

import numpy as np
import jax
import jax.numpy as jnp
from jax.experimental import pallas as pl
from jax.experimental.pallas import tpu as pltpu


# ----------------------------------------------------------------------------
# Fused kernel: decode + class max/argmax + greedy NMS for Bt batch elements.
#   x_ref      : [F, Bt, A]
#   anchor_ref : [4, A]
#   out_ref    : [6, Bt, top_k]   rows = [cls, score, x1, y1, x2, y2]
# ----------------------------------------------------------------------------
def _ssd_fused_kernel(x_ref, anchor_ref, out_ref, *, num_classes, top_k,
                      iou_threshold):
    C = num_classes
    _, Bt, A = x_ref.shape
    f32 = jnp.float32

    # ---- class max / argmax: balanced binary tree reduce ---------------------
    # combine(left, right) keeps right only on strict '>', and left always holds
    # the lower class indices -> identical to the reference's first-max-wins.
    leaves = [(x_ref[1 + c].astype(f32), jnp.float32(c)) for c in range(C)]
    while len(leaves) > 1:
        nxt = []
        for i in range(0, len(leaves) - 1, 2):
            (sa, ca), (sb, cb) = leaves[i], leaves[i + 1]
            take_b = sb > sa
            nxt.append((jnp.where(take_b, sb, sa), jnp.where(take_b, cb, ca)))
        if len(leaves) % 2:
            nxt.append(leaves[-1])
        leaves = nxt
    score, cls = leaves[0]
    if C == 1:
        cls = jnp.zeros_like(score)

    # ---- box decode, anchors lane-dense; constant divides folded to muls -----
    a_x = anchor_ref[0:1, :]
    a_y = anchor_ref[1:2, :]
    a_w = anchor_ref[2:3, :]
    a_h = anchor_ref[3:4, :]
    d_x = x_ref[C + 1].astype(f32)
    d_y = x_ref[C + 2].astype(f32)
    d_w = x_ref[C + 3].astype(f32)
    d_h = x_ref[C + 4].astype(f32)

    cx = d_x * (a_w * 0.1) + a_x
    cy = d_y * (a_h * 0.1) + a_y
    w = jnp.exp(d_w * 0.2) * a_w
    h = jnp.exp(d_h * 0.2) * a_h
    x1 = cx - 0.5 * w
    x2 = cx + 0.5 * w
    y1 = cy - 0.5 * h
    y2 = cy + 0.5 * h

    # ---- loop-invariant NMS precompute ----------------------------------------
    thr = jnp.float32(iou_threshold)
    one_plus_thr = jnp.float32(1.0 + iou_threshold)
    thr_area2 = thr * ((x2 - x1) * (y2 - y1))                        # [Bt, A]
    lane_ids = jax.lax.broadcasted_iota(jnp.int32, (Bt, A), 1)       # [Bt, A]
    col_ids = jax.lax.broadcasted_iota(jnp.int32, (Bt, top_k), 1)    # [Bt, top_k]
    # stacked candidate planes for the single fused pick reduction
    cand = jnp.stack([cls, x1, y1, x2, y2], axis=0)                  # [5, Bt, A]

    def body(idx, carry):
        work, k_cls, k_sc, k_x1, k_y1, k_x2, k_y2 = carry

        best = jnp.max(work, axis=1, keepdims=True)                  # [Bt, 1]
        active = best >= 0.01                                        # [Bt, 1]
        # first (lowest-index) maximum -> matches the reference stable sort
        sel_id = jnp.min(jnp.where(work == best, lane_ids, A),
                         axis=1, keepdims=True)                      # [Bt, 1]
        sel_mask = lane_ids == sel_id                                 # [Bt, A]

        # ONE fused masked cross-lane reduce extracts all 5 selected components.
        picked = jnp.sum(jnp.where(sel_mask[None, :, :], cand, 0.0),
                         axis=2, keepdims=True)                       # [5, Bt, 1]
        s_cls, s_x1, s_y1, s_x2, s_y2 = (picked[0], picked[1], picked[2],
                                         picked[3], picked[4])
        s_sc = best

        upd = (col_ids == idx) & active                               # [Bt, top_k]
        k_cls = jnp.where(upd, s_cls, k_cls)
        k_sc = jnp.where(upd, s_sc, k_sc)
        k_x1 = jnp.where(upd, s_x1, k_x1)
        k_y1 = jnp.where(upd, s_y1, k_y1)
        k_x2 = jnp.where(upd, s_x2, k_x2)
        k_y2 = jnp.where(upd, s_y2, k_y2)

        # Divide-free IoU test (denominator > 0 for valid anchors; the 0/0 edge
        # case suppresses either way, matching the reference NaN path).
        #   common/(area1+area2-common) >= thr  <=>
        #   common*(1+thr) >= thr*area1 + thr*area2        (thr*area2 hoisted)
        area1 = (s_x2 - s_x1) * (s_y2 - s_y1)                         # [Bt, 1]
        common = (jnp.clip(jnp.minimum(s_x2, x2) - jnp.maximum(s_x1, x1), 0.0, 1.0)
                  * jnp.clip(jnp.minimum(s_y2, y2) - jnp.maximum(s_y1, y1), 0.0, 1.0))
        suppress = (common * one_plus_thr >= thr * area1 + thr_area2) | sel_mask
        # Extra suppression on an inactive row is harmless: output writes are
        # gated by `active`, and an inactive row can never become active again.
        work = jnp.where(suppress, -jnp.inf, work)
        return work, k_cls, k_sc, k_x1, k_y1, k_x2, k_y2

    zeros = jnp.zeros((Bt, top_k), f32)
    init = (score, zeros, zeros, zeros, zeros, zeros, zeros)
    unroll = top_k if top_k <= 8 else 4   # full unroll only for small top_k
    _, k_cls, k_sc, k_x1, k_y1, k_x2, k_y2 = jax.lax.fori_loop(
        0, top_k, body, init, unroll=unroll)

    out_ref[0] = k_cls
    out_ref[1] = k_sc
    out_ref[2] = k_x1
    out_ref[3] = k_y1
    out_ref[4] = k_x2
    out_ref[5] = k_y2


# ----------------------------------------------------------------------------
# Batch-tile selection: biggest sublane-aligned Bt that fits a VMEM budget while
# keeping >=2 grid steps (so v7x megacore can shard the "parallel" axis).
# ----------------------------------------------------------------------------
def _choose_bt(b_pad, f, a, itemsize, sublane):
    budget = 24 * 2**20  # stay under the default scoped-VMEM limit with headroom
    for bt in (32, 16, sublane):
        if bt % sublane or b_pad % bt:
            continue
        if bt > sublane and b_pad // bt < 2:
            continue
        need = 2 * f * bt * a * itemsize + 26 * bt * a * 4
        if need <= budget:
            return bt
    return sublane


# ----------------------------------------------------------------------------
# Wrapper: layout plumbing (cast -> pad -> transpose) + pallas_call
# ----------------------------------------------------------------------------
def ssd_postprocess(x, anchor, *, top_k, iou_threshold, input_dtype=jnp.float32):
    B, A, F = x.shape
    C = F - 5  # number of foreground classes
    in_dtype = jnp.dtype(input_dtype)
    sublane = 16 if in_dtype.itemsize == 2 else 8

    # cast first (an fp32->bf16 shrink also halves the transpose traffic), then
    # pad the batch to a full sublane multiple (no giant fallback blocks).
    xb = x.astype(in_dtype)
    B_pad = ((B + sublane - 1) // sublane) * sublane
    if B_pad != B:
        xb = jnp.concatenate([xb, jnp.zeros((B_pad - B, A, F), in_dtype)], axis=0)

    # TODO(synk): extra HBM round trip; the real fix is a channel-major head.
    xT = jnp.transpose(xb, (2, 0, 1))                               # [F, B_pad, A]
    anchorT = jnp.transpose(anchor.astype(jnp.float32), (1, 0))     # [4, A]

    Bt = _choose_bt(B_pad, F, A, in_dtype.itemsize, sublane)

    # explicit VMEM budget: double-buffered input/anchor/output blocks plus the
    # loop-live [Bt, A] intermediates (~26 planes incl. the stacked candidates).
    est = (2 * (F * Bt * A * in_dtype.itemsize + 4 * A * 4 + 6 * Bt * top_k * 4)
           + 26 * Bt * A * 4)
    vmem_limit = int(min(64 * 2**20, max(32 * 2**20, int(est * 1.5))))

    kernel = functools.partial(_ssd_fused_kernel, num_classes=C, top_k=top_k,
                               iou_threshold=float(iou_threshold))

    out = pl.pallas_call(
        kernel,
        out_shape=jax.ShapeDtypeStruct((6, B_pad, top_k), jnp.float32),
        grid=(B_pad // Bt,),
        in_specs=[
            pl.BlockSpec((F, Bt, A), lambda b: (0, b, 0)),
            pl.BlockSpec((4, A), lambda b: (0, 0)),
        ],
        out_specs=pl.BlockSpec((6, Bt, top_k), lambda b: (0, b, 0)),
        compiler_params=pltpu.CompilerParams(
            dimension_semantics=("parallel",),
            vmem_limit_bytes=vmem_limit),
    )(xT, anchorT)

    out = jnp.transpose(out, (1, 2, 0))                              # [B_pad, top_k, 6]
    return out[:B]


# ----------------------------------------------------------------------------
# Pure numpy reference mirroring the PyTorch code (for the self-check)
# ----------------------------------------------------------------------------
def _reference_postprocess(x, anchor, top_k, iou_threshold):
    B, A, F = x.shape
    C = F - 5
    out = np.zeros((B, top_k, 6), np.float32)
    for i in range(B):
        logits = x[i, :, 1:C + 1]
        score = logits.max(axis=1)
        cls = logits.argmax(axis=1).astype(np.float32)
        d = x[i, :, C + 1:]
        cx = d[:, 0] * anchor[:, 2] / 10.0 + anchor[:, 0]
        cy = d[:, 1] * anchor[:, 3] / 10.0 + anchor[:, 1]
        w = np.exp(d[:, 2] / 5.0) * anchor[:, 2]
        h = np.exp(d[:, 3] / 5.0) * anchor[:, 3]
        x1 = cx - w / 2.0
        x2 = cx + w / 2.0
        y1 = cy - h / 2.0
        y2 = cy + h / 2.0
        det = np.stack([cls, score, x1, y1, x2, y2], axis=1).astype(np.float32)
        det = det[np.argsort(-score, kind="stable")]
        idx = 0
        while det.shape[0] > 0 and det[0, 1] >= 0.01 and idx < top_k:
            out[i, idx] = det[0]
            b1 = det[0, 2:]
            b2 = det[1:, 2:]
            area1 = (b1[2] - b1[0]) * (b1[3] - b1[1])
            area2 = (b2[:, 2] - b2[:, 0]) * (b2[:, 3] - b2[:, 1])
            xl = np.maximum(b1[0], b2[:, 0])
            xr = np.minimum(b1[2], b2[:, 2])
            yt = np.maximum(b1[1], b2[:, 1])
            yb = np.minimum(b1[3], b2[:, 3])
            common = np.clip(xr - xl, 0.0, 1.0) * np.clip(yb - yt, 0.0, 1.0)
            ious = common / (area1 + area2 - common)
            det = det[1:][ious < iou_threshold]
            idx += 1
    return out


if __name__ == "__main__":
    B, A, C = 2, 64, 8          # batch, anchors, foreground classes
    F = C + 1 + 4               # background + classes + 4 deltas
    top_k = 8
    iou_threshold = 0.5

    key = jax.random.PRNGKey(0)
    x = jax.random.normal(key, (B, A, F), dtype=jnp.float32)

    # deterministic anchors: centers on an 8x8 grid in [0, 1), fixed w/h
    g = int(np.sqrt(A))
    cyy, cxx = np.meshgrid(np.linspace(0.05, 0.95, g),
                           np.linspace(0.05, 0.95, g), indexing="ij")
    anchor_np = np.stack(
        [cxx.reshape(-1), cyy.reshape(-1),
         np.full((A,), 0.20), np.full((A,), 0.25)],
        axis=1,
    ).astype(np.float32)
    anchor = jnp.asarray(anchor_np)

    out = ssd_postprocess(x, anchor, top_k=top_k, iou_threshold=iou_threshold)
    out = jax.block_until_ready(out)

    ref = _reference_postprocess(np.asarray(x), anchor_np, top_k, iou_threshold)
    np.testing.assert_allclose(np.asarray(out), ref, rtol=1e-4, atol=1e-4)

    print("KERNEL_OK")
</pallas_src>

<mosaic_0001>
module attributes {stable_mosaic.version = 11 : i64} {
  func.func @_ssd_fused_kernel(%arg0: i32, %arg1: memref<13x8x64xf32, #tpu.memory_space<vmem>>, %arg2: memref<4x64xf32, #tpu.memory_space<vmem>>, %arg3: memref<6x8x8xf32, #tpu.memory_space<vmem>>) attributes {dimension_semantics = [#tpu.dimension_semantics<parallel>], iteration_bounds = array<i64: 1>, scalar_prefetch = 0 : i64, scratch_operands = 0 : i64, tpu.core_type = #tpu.core_type<tc>, window_params = [{transform_indices = @transform_0, window_bounds = array<i64: 13, 8, 64>}, {pipeline_mode = #tpu.pipeline_mode<synchronous>, transform_indices = @transform_1, window_bounds = array<i64: 4, 64>}, {transform_indices = @transform_2, window_bounds = array<i64: 6, 8, 8>}]} {
    %c1 = arith.constant 1 : index
    %c0 = arith.constant 0 : index
    %c0_0 = arith.constant 0 : index
    %0 = vector.load %arg1[%c1, %c0, %c0_0] : memref<13x8x64xf32, #tpu.memory_space<vmem>>, vector<1x8x64xf32>
    %1 = vector.shape_cast %0 : vector<1x8x64xf32> to vector<8x64xf32>
    %c2 = arith.constant 2 : index
    %c0_1 = arith.constant 0 : index
    %c0_2 = arith.constant 0 : index
    %2 = vector.load %arg1[%c2, %c0_1, %c0_2] : memref<13x8x64xf32, #tpu.memory_space<vmem>>, vector<1x8x64xf32>
    %3 = vector.shape_cast %2 : vector<1x8x64xf32> to vector<8x64xf32>
    %c3 = arith.constant 3 : index
    %c0_3 = arith.constant 0 : index
    %c0_4 = arith.constant 0 : index
    %4 = vector.load %arg1[%c3, %c0_3, %c0_4] : memref<13x8x64xf32, #tpu.memory_space<vmem>>, vector<1x8x64xf32>
    %5 = vector.shape_cast %4 : vector<1x8x64xf32> to vector<8x64xf32>
    %c4 = arith.constant 4 : index
    %c0_5 = arith.constant 0 : index
    %c0_6 = arith.constant 0 : index
    %6 = vector.load %arg1[%c4, %c0_5, %c0_6] : memref<13x8x64xf32, #tpu.memory_space<vmem>>, vector<1x8x64xf32>
    %7 = vector.shape_cast %6 : vector<1x8x64xf32> to vector<8x64xf32>
    %c5 = arith.constant 5 : index
    %c0_7 = arith.constant 0 : index
    %c0_8 = arith.constant 0 : index
    %8 = vector.load %arg1[%c5, %c0_7, %c0_8] : memref<13x8x64xf32, #tpu.memory_space<vmem>>, vector<1x8x64xf32>
    %9 = vector.shape_cast %8 : vector<1x8x64xf32> to vector<8x64xf32>
    %c6 = arith.constant 6 : index
    %c0_9 = arith.constant 0 : index
    %c0_10 = arith.constant 0 : index
    %10 = vector.load %arg1[%c6, %c0_9, %c0_10] : memref<13x8x64xf32, #tpu.memory_space<vmem>>, vector<1x8x64xf32>
    %11 = vector.shape_cast %10 : vector<1x8x64xf32> to vector<8x64xf32>
    %c7 = arith.constant 7 : index
    %c0_11 = arith.constant 0 : index
    %c0_12 = arith.constant 0 : index
    %12 = vector.load %arg1[%c7, %c0_11, %c0_12] : memref<13x8x64xf32, #tpu.memory_space<vmem>>, vector<1x8x64xf32>
    %13 = vector.shape_cast %12 : vector<1x8x64xf32> to vector<8x64xf32>
    %c8 = arith.constant 8 : index
    %c0_13 = arith.constant 0 : index
    %c0_14 = arith.constant 0 : index
    %14 = vector.load %arg1[%c8, %c0_13, %c0_14] : memref<13x8x64xf32, #tpu.memory_space<vmem>>, vector<1x8x64xf32>
    %15 = vector.shape_cast %14 : vector<1x8x64xf32> to vector<8x64xf32>
    %16 = arith.cmpf ogt, %3, %1 : vector<8x64xf32>
    %17 = arith.select %16, %3, %1 : vector<8x64xi1>, vector<8x64xf32>
    %cst = arith.constant 1.000000e+00 : f32
    %cst_15 = arith.constant 0.000000e+00 : f32
    %18 = vector.broadcast %cst : f32 to vector<8x64xf32>
    %19 = vector.broadcast %cst_15 : f32 to vector<8x64xf32>
    %20 = arith.select %16, %18, %19 : vector<8x64xi1>, vector<8x64xf32>
    %21 = arith.cmpf ogt, %7, %5 : vector<8x64xf32>
    %22 = arith.select %21, %7, %5 : vector<8x64xi1>, vector<8x64xf32>
    %cst_16 = arith.constant 3.000000e+00 : f32
    %cst_17 = arith.constant 2.000000e+00 : f32
    %23 = vector.broadcast %cst_16 : f32 to vector<8x64xf32>
    %24 = vector.broadcast %cst_17 : f32 to vector<8x64xf32>
    %25 = arith.select %21, %23, %24 : vector<8x64xi1>, vector<8x64xf32>
    %26 = arith.cmpf ogt, %11, %9 : vector<8x64xf32>
    %27 = arith.select %26, %11, %9 : vector<8x64xi1>, vector<8x64xf32>
    %cst_18 = arith.constant 5.000000e+00 : f32
    %cst_19 = arith.constant 4.000000e+00 : f32
    %28 = vector.broadcast %cst_18 : f32 to vector<8x64xf32>
    %29 = vector.broadcast %cst_19 : f32 to vector<8x64xf32>
    %30 = arith.select %26, %28, %29 : vector<8x64xi1>, vector<8x64xf32>
    %31 = arith.cmpf ogt, %15, %13 : vector<8x64xf32>
    %32 = arith.select %31, %15, %13 : vector<8x64xi1>, vector<8x64xf32>
    %cst_20 = arith.constant 7.000000e+00 : f32
    %cst_21 = arith.constant 6.000000e+00 : f32
    %33 = vector.broadcast %cst_20 : f32 to vector<8x64xf32>
    %34 = vector.broadcast %cst_21 : f32 to vector<8x64xf32>
    %35 = arith.select %31, %33, %34 : vector<8x64xi1>, vector<8x64xf32>
    %36 = arith.cmpf ogt, %22, %17 : vector<8x64xf32>
    %37 = arith.select %36, %22, %17 : vector<8x64xi1>, vector<8x64xf32>
    %38 = arith.select %36, %25, %20 : vector<8x64xi1>, vector<8x64xf32>
    %39 = arith.cmpf ogt, %32, %27 : vector<8x64xf32>
    %40 = arith.select %39, %32, %27 : vector<8x64xi1>, vector<8x64xf32>
    %41 = arith.select %39, %35, %30 : vector<8x64xi1>, vector<8x64xf32>
    %42 = arith.cmpf ogt, %40, %37 : vector<8x64xf32>
    %43 = arith.select %42, %40, %37 : vector<8x64xi1>, vector<8x64xf32>
    %44 = arith.select %42, %41, %38 : vector<8x64xi1>, vector<8x64xf32>
    %c0_22 = arith.constant 0 : index
    %c0_23 = arith.constant 0 : index
    %45 = vector.load %arg2[%c0_22, %c0_23] : memref<4x64xf32, #tpu.memory_space<vmem>>, vector<1x64xf32>
    %c1_24 = arith.constant 1 : index
    %c0_25 = arith.constant 0 : index
    %46 = vector.load %arg2[%c1_24, %c0_25] : memref<4x64xf32, #tpu.memory_space<vmem>>, vector<1x64xf32>
    %c2_26 = arith.constant 2 : index
    %c0_27 = arith.constant 0 : index
    %47 = vector.load %arg2[%c2_26, %c0_27] : memref<4x64xf32, #tpu.memory_space<vmem>>, vector<1x64xf32>
    %c3_28 = arith.constant 3 : index
    %c0_29 = arith.constant 0 : index
    %48 = vector.load %arg2[%c3_28, %c0_29] : memref<4x64xf32, #tpu.memory_space<vmem>>, vector<1x64xf32>
    %c9 = arith.constant 9 : index
    %c0_30 = arith.constant 0 : index
    %c0_31 = arith.constant 0 : index
    %49 = vector.load %arg1[%c9, %c0_30, %c0_31] : memref<13x8x64xf32, #tpu.memory_space<vmem>>, vector<1x8x64xf32>
    %50 = vector.shape_cast %49 : vector<1x8x64xf32> to vector<8x64xf32>
    %c10 = arith.constant 10 : index
    %c0_32 = arith.constant 0 : index
    %c0_33 = arith.constant 0 : index
    %51 = vector.load %arg1[%c10, %c0_32, %c0_33] : memref<13x8x64xf32, #tpu.memory_space<vmem>>, vector<1x8x64xf32>
    %52 = vector.shape_cast %51 : vector<1x8x64xf32> to vector<8x64xf32>
    %c11 = arith.constant 11 : index
    %c0_34 = arith.constant 0 : index
    %c0_35 = arith.constant 0 : index
    %53 = vector.load %arg1[%c11, %c0_34, %c0_35] : memref<13x8x64xf32, #tpu.memory_space<vmem>>, vector<1x8x64xf32>
    %54 = vector.shape_cast %53 : vector<1x8x64xf32> to vector<8x64xf32>
    %c12 = arith.constant 12 : index
    %c0_36 = arith.constant 0 : index
    %c0_37 = arith.constant 0 : index
    %55 = vector.load %arg1[%c12, %c0_36, %c0_37] : memref<13x8x64xf32, #tpu.memory_space<vmem>>, vector<1x8x64xf32>
    %56 = vector.shape_cast %55 : vector<1x8x64xf32> to vector<8x64xf32>
    %cst_38 = arith.constant 1.000000e-01 : f32
    %57 = vector.broadcast %cst_38 : f32 to vector<1x64xf32>
    %58 = arith.mulf %47, %57 : vector<1x64xf32>
    %59 = vector.broadcast %58 : vector<1x64xf32> to vector<8x64xf32>
    %60 = arith.mulf %50, %59 : vector<8x64xf32>
    %61 = vector.broadcast %45 : vector<1x64xf32> to vector<8x64xf32>
    %62 = arith.addf %60, %61 : vector<8x64xf32>
    %cst_39 = arith.constant 1.000000e-01 : f32
    %63 = vector.broadcast %cst_39 : f32 to vector<1x64xf32>
    %64 = arith.mulf %48, %63 : vector<1x64xf32>
    %65 = vector.broadcast %64 : vector<1x64xf32> to vector<8x64xf32>
    %66 = arith.mulf %52, %65 : vector<8x64xf32>
    %67 = vector.broadcast %46 : vector<1x64xf32> to vector<8x64xf32>
    %68 = arith.addf %66, %67 : vector<8x64xf32>
    %cst_40 = arith.constant 2.000000e-01 : f32
    %69 = vector.broadcast %cst_40 : f32 to vector<8x64xf32>
    %70 = arith.mulf %54, %69 : vector<8x64xf32>
    %71 = math.exp %70 : vector<8x64xf32>
    %72 = vector.broadcast %47 : vector<1x64xf32> to vector<8x64xf32>
    %73 = arith.mulf %71, %72 : vector<8x64xf32>
    %cst_41 = arith.constant 2.000000e-01 : f32
    %74 = vector.broadcast %cst_41 : f32 to vector<8x64xf32>
    %75 = arith.mulf %56, %74 : vector<8x64xf32>
    %76 = math.exp %75 : vector<8x64xf32>
    %77 = vector.broadcast %48 : vector<1x64xf32> to vector<8x64xf32>
    %78 = arith.mulf %76, %77 : vector<8x64xf32>
    %cst_42 = arith.constant 5.000000e-01 : f32
    %79 = vector.broadcast %cst_42 : f32 to vector<8x64xf32>
    %80 = arith.mulf %79, %73 : vector<8x64xf32>
    %81 = arith.subf %62, %80 : vector<8x64xf32>
    %cst_43 = arith.constant 5.000000e-01 : f32
    %82 = vector.broadcast %cst_43 : f32 to vector<8x64xf32>
    %83 = arith.mulf %82, %73 : vector<8x64xf32>
    %84 = arith.addf %62, %83 : vector<8x64xf32>
    %cst_44 = arith.constant 5.000000e-01 : f32
    %85 = vector.broadcast %cst_44 : f32 to vector<8x64xf32>
    %86 = arith.mulf %85, %78 : vector<8x64xf32>
    %87 = arith.subf %68, %86 : vector<8x64xf32>
    %cst_45 = arith.constant 5.000000e-01 : f32
    %88 = vector.broadcast %cst_45 : f32 to vector<8x64xf32>
    %89 = arith.mulf %88, %78 : vector<8x64xf32>
    %90 = arith.addf %68, %89 : vector<8x64xf32>
    %91 = arith.subf %84, %81 : vector<8x64xf32>
    %92 = arith.subf %90, %87 : vector<8x64xf32>
    %93 = arith.mulf %91, %92 : vector<8x64xf32>
    %cst_46 = arith.constant 5.000000e-01 : f32
    %94 = vector.broadcast %cst_46 : f32 to vector<8x64xf32>
    %95 = arith.mulf %94, %93 : vector<8x64xf32>
    %96 = tpu.iota {dimensions = array<i32: 1>} : vector<8x64xi32>
    %97 = tpu.iota {dimensions = array<i32: 1>} : vector<8x8xi32>
    %98 = vector.shape_cast %44 : vector<8x64xf32> to vector<1x8x64xf32>
    %99 = vector.shape_cast %81 : vector<8x64xf32> to vector<1x8x64xf32>
    %100 = vector.shape_cast %87 : vector<8x64xf32> to vector<1x8x64xf32>
    %101 = vector.shape_cast %84 : vector<8x64xf32> to vector<1x8x64xf32>
    %102 = vector.shape_cast %90 : vector<8x64xf32> to vector<1x8x64xf32>
    %103 = tpu.concatenate %98, %99, %100, %101, %102 in 0 : vector<1x8x64xf32>, vector<1x8x64xf32>, vector<1x8x64xf32>, vector<1x8x64xf32>, vector<1x8x64xf32> -> vector<5x8x64xf32>
    %cst_47 = arith.constant 0.000000e+00 : f32
    %104 = vector.broadcast %cst_47 : f32 to vector<8x8xf32>
    %cst_48 = arith.constant 1.500000e+00 : f32
    %cst_49 = arith.constant 5.000000e-01 : f32
    %c0_i32 = arith.constant 0 : i32
    %cst_50 = arith.constant dense<0xFF800000> : vector<8xf32>
    %105 = vector.multi_reduction <maximumf>, %43, %cst_50 [1] : vector<8x64xf32> to vector<8xf32>
    %106 = vector.shape_cast %105 : vector<8xf32> to vector<8x1xf32>
    %cst_51 = arith.constant 0.00999999977 : f32
    %107 = vector.broadcast %cst_51 : f32 to vector<8x1xf32>
    %108 = arith.cmpf oge, %106, %107 : vector<8x1xf32>
    %109 = vector.broadcast %106 : vector<8x1xf32> to vector<8x64xf32>
    %110 = arith.cmpf oeq, %43, %109 : vector<8x64xf32>
    %c64_i32 = arith.constant 64 : i32
    %111 = vector.broadcast %c64_i32 : i32 to vector<8x64xi32>
    %112 = arith.select %110, %96, %111 : vector<8x64xi1>, vector<8x64xi32>
    %cst_52 = arith.constant dense<2147483647> : vector<8xi32>
    %113 = vector.multi_reduction <minsi>, %112, %cst_52 [1] : vector<8x64xi32> to vector<8xi32>
    %114 = vector.shape_cast %113 : vector<8xi32> to vector<8x1xi32>
    %115 = vector.broadcast %114 : vector<8x1xi32> to vector<8x64xi32>
    %116 = arith.cmpi eq, %96, %115 : vector<8x64xi32>
    %117 = vector.shape_cast %116 : vector<8x64xi1> to vector<1x8x64xi1>
    %cst_53 = arith.constant 0.000000e+00 : f32
    %118 = vector.shape_cast %117 : vector<1x8x64xi1> to vector<1x8x64xi1>
    %119 = vector.broadcast %118 : vector<1x8x64xi1> to vector<5x8x64xi1>
    %120 = vector.broadcast %cst_53 : f32 to vector<5x8x64xf32>
    %121 = arith.select %119, %103, %120 : vector<5x8x64xi1>, vector<5x8x64xf32>
    %cst_54 = arith.constant dense<0.000000e+00> : vector<5x8xf32>
    %122 = vector.multi_reduction <add>, %121, %cst_54 [2] : vector<5x8x64xf32> to vector<5x8xf32>
    %123 = vector.shape_cast %122 : vector<5x8xf32> to vector<5x8x1xf32>
    %124 = vector.extract_strided_slice %123 {offsets = [0, 0, 0], sizes = [1, 8, 1], strides = [1, 1, 1]} : vector<5x8x1xf32> to vector<1x8x1xf32>
    %125 = vector.shape_cast %124 : vector<1x8x1xf32> to vector<8x1xf32>
    %126 = vector.extract_strided_slice %123 {offsets = [1, 0, 0], sizes = [1, 8, 1], strides = [1, 1, 1]} : vector<5x8x1xf32> to vector<1x8x1xf32>
    %127 = vector.shape_cast %126 : vector<1x8x1xf32> to vector<8x1xf32>
    %128 = vector.extract_strided_slice %123 {offsets = [2, 0, 0], sizes = [1, 8, 1], strides = [1, 1, 1]} : vector<5x8x1xf32> to vector<1x8x1xf32>
    %129 = vector.shape_cast %128 : vector<1x8x1xf32> to vector<8x1xf32>
    %130 = vector.extract_strided_slice %123 {offsets = [3, 0, 0], sizes = [1, 8, 1], strides = [1, 1, 1]} : vector<5x8x1xf32> to vector<1x8x1xf32>
    %131 = vector.shape_cast %130 : vector<1x8x1xf32> to vector<8x1xf32>
    %132 = vector.extract_strided_slice %123 {offsets = [4, 0, 0], sizes = [1, 8, 1], strides = [1, 1, 1]} : vector<5x8x1xf32> to vector<1x8x1xf32>
    %133 = vector.shape_cast %132 : vector<1x8x1xf32> to vector<8x1xf32>
    %134 = vector.broadcast %c0_i32 : i32 to vector<8x8xi32>
    %135 = arith.cmpi eq, %97, %134 : vector<8x8xi32>
    %136 = vector.broadcast %108 : vector<8x1xi1> to vector<8x8xi1>
    %137 = arith.andi %135, %136 : vector<8x8xi1>
    %138 = vector.shape_cast %125 : vector<8x1xf32> to vector<8x1xf32>
    %139 = vector.broadcast %138 : vector<8x1xf32> to vector<8x8xf32>
    %140 = arith.select %137, %139, %104 : vector<8x8xi1>, vector<8x8xf32>
    %141 = vector.shape_cast %106 : vector<8x1xf32> to vector<8x1xf32>
    %142 = vector.broadcast %141 : vector<8x1xf32> to vector<8x8xf32>
    %143 = arith.select %137, %142, %104 : vector<8x8xi1>, vector<8x8xf32>
    %144 = vector.shape_cast %127 : vector<8x1xf32> to vector<8x1xf32>
    %145 = vector.broadcast %144 : vector<8x1xf32> to vector<8x8xf32>
    %146 = arith.select %137, %145, %104 : vector<8x8xi1>, vector<8x8xf32>
    %147 = vector.shape_cast %129 : vector<8x1xf32> to vector<8x1xf32>
    %148 = vector.broadcast %147 : vector<8x1xf32> to vector<8x8xf32>
    %149 = arith.select %137, %148, %104 : vector<8x8xi1>, vector<8x8xf32>
    %150 = vector.shape_cast %131 : vector<8x1xf32> to vector<8x1xf32>
    %151 = vector.broadcast %150 : vector<8x1xf32> to vector<8x8xf32>
    %152 = arith.select %137, %151, %104 : vector<8x8xi1>, vector<8x8xf32>
    %153 = vector.shape_cast %133 : vector<8x1xf32> to vector<8x1xf32>
    %154 = vector.broadcast %153 : vector<8x1xf32> to vector<8x8xf32>
    %155 = arith.select %137, %154, %104 : vector<8x8xi1>, vector<8x8xf32>
    %156 = arith.subf %131, %127 : vector<8x1xf32>
    %157 = arith.subf %133, %129 : vector<8x1xf32>
    %158 = arith.mulf %156, %157 : vector<8x1xf32>
    %159 = vector.broadcast %131 : vector<8x1xf32> to vector<8x64xf32>
    %160 = arith.minimumf %159, %84 : vector<8x64xf32>
    %161 = vector.broadcast %127 : vector<8x1xf32> to vector<8x64xf32>
    %162 = arith.maximumf %161, %81 : vector<8x64xf32>
    %163 = arith.subf %160, %162 : vector<8x64xf32>
    %cst_55 = arith.constant 0.000000e+00 : f32
    %cst_56 = arith.constant 1.000000e+00 : f32
    %164 = vector.broadcast %cst_55 : f32 to vector<8x64xf32>
    %165 = arith.maximumf %164, %163 : vector<8x64xf32>
    %166 = vector.broadcast %cst_56 : f32 to vector<8x64xf32>
    %167 = arith.minimumf %166, %165 : vector<8x64xf32>
    %168 = vector.broadcast %133 : vector<8x1xf32> to vector<8x64xf32>
    %169 = arith.minimumf %168, %90 : vector<8x64xf32>
    %170 = vector.broadcast %129 : vector<8x1xf32> to vector<8x64xf32>
    %171 = arith.maximumf %170, %87 : vector<8x64xf32>
    %172 = arith.subf %169, %171 : vector<8x64xf32>
    %cst_57 = arith.constant 0.000000e+00 : f32
    %cst_58 = arith.constant 1.000000e+00 : f32
    %173 = vector.broadcast %cst_57 : f32 to vector<8x64xf32>
    %174 = arith.maximumf %173, %172 : vector<8x64xf32>
    %175 = vector.broadcast %cst_58 : f32 to vector<8x64xf32>
    %176 = arith.minimumf %175, %174 : vector<8x64xf32>
    %177 = arith.mulf %167, %176 : vector<8x64xf32>
    %178 = vector.broadcast %cst_48 : f32 to vector<8x64xf32>
    %179 = arith.mulf %177, %178 : vector<8x64xf32>
    %180 = vector.broadcast %cst_49 : f32 to vector<8x1xf32>
    %181 = arith.mulf %180, %158 : vector<8x1xf32>
    %182 = vector.broadcast %181 : vector<8x1xf32> to vector<8x64xf32>
    %183 = arith.addf %182, %95 : vector<8x64xf32>
    %184 = arith.cmpf oge, %179, %183 : vector<8x64xf32>
    %185 = arith.ori %184, %116 : vector<8x64xi1>
    %cst_59 = arith.constant 0xFF800000 : f32
    %186 = vector.broadcast %cst_59 : f32 to vector<8x64xf32>
    %187 = arith.select %185, %186, %43 : vector<8x64xi1>, vector<8x64xf32>
    %c1_i32 = arith.constant 1 : i32
    %cst_60 = arith.constant dense<0xFF800000> : vector<8xf32>
    %188 = vector.multi_reduction <maximumf>, %187, %cst_60 [1] : vector<8x64xf32> to vector<8xf32>
    %189 = vector.shape_cast %188 : vector<8xf32> to vector<8x1xf32>
    %cst_61 = arith.constant 0.00999999977 : f32
    %190 = vector.broadcast %cst_61 : f32 to vector<8x1xf32>
    %191 = arith.cmpf oge, %189, %190 : vector<8x1xf32>
    %192 = vector.broadcast %189 : vector<8x1xf32> to vector<8x64xf32>
    %193 = arith.cmpf oeq, %187, %192 : vector<8x64xf32>
    %c64_i32_62 = arith.constant 64 : i32
    %194 = vector.broadcast %c64_i32_62 : i32 to vector<8x64xi32>
    %195 = arith.select %193, %96, %194 : vector<8x64xi1>, vector<8x64xi32>
    %cst_63 = arith.constant dense<2147483647> : vector<8xi32>
    %196 = vector.multi_reduction <minsi>, %195, %cst_63 [1] : vector<8x64xi32> to vector<8xi32>
    %197 = vector.shape_cast %196 : vector<8xi32> to vector<8x1xi32>
    %198 = vector.broadcast %197 : vector<8x1xi32> to vector<8x64xi32>
    %199 = arith.cmpi eq, %96, %198 : vector<8x64xi32>
    %200 = vector.shape_cast %199 : vector<8x64xi1> to vector<1x8x64xi1>
    %cst_64 = arith.constant 0.000000e+00 : f32
    %201 = vector.shape_cast %200 : vector<1x8x64xi1> to vector<1x8x64xi1>
    %202 = vector.broadcast %201 : vector<1x8x64xi1> to vector<5x8x64xi1>
    %203 = vector.broadcast %cst_64 : f32 to vector<5x8x64xf32>
    %204 = arith.select %202, %103, %203 : vector<5x8x64xi1>, vector<5x8x64xf32>
    %cst_65 = arith.constant dense<0.000000e+00> : vector<5x8xf32>
    %205 = vector.multi_reduction <add>, %204, %cst_65 [2] : vector<5x8x64xf32> to vector<5x8xf32>
    %206 = vector.shape_cast %205 : vector<5x8xf32> to vector<5x8x1xf32>
    %207 = vector.extract_strided_slice %206 {offsets = [0, 0, 0], sizes = [1, 8, 1], strides = [1, 1, 1]} : vector<5x8x1xf32> to vector<1x8x1xf32>
    %208 = vector.shape_cast %207 : vector<1x8x1xf32> to vector<8x1xf32>
    %209 = vector.extract_strided_slice %206 {offsets = [1, 0, 0], sizes = [1, 8, 1], strides = [1, 1, 1]} : vector<5x8x1xf32> to vector<1x8x1xf32>
    %210 = vector.shape_cast %209 : vector<1x8x1xf32> to vector<8x1xf32>
    %211 = vector.extract_strided_slice %206 {offsets = [2, 0, 0], sizes = [1, 8, 1], strides = [1, 1, 1]} : vector<5x8x1xf32> to vector<1x8x1xf32>
    %212 = vector.shape_cast %211 : vector<1x8x1xf32> to vector<8x1xf32>
    %213 = vector.extract_strided_slice %206 {offsets = [3, 0, 0], sizes = [1, 8, 1], strides = [1, 1, 1]} : vector<5x8x1xf32> to vector<1x8x1xf32>
    %214 = vector.shape_cast %213 : vector<1x8x1xf32> to vector<8x1xf32>
    %215 = vector.extract_strided_slice %206 {offsets = [4, 0, 0], sizes = [1, 8, 1], strides = [1, 1, 1]} : vector<5x8x1xf32> to vector<1x8x1xf32>
    %216 = vector.shape_cast %215 : vector<1x8x1xf32> to vector<8x1xf32>
    %217 = vector.broadcast %c1_i32 : i32 to vector<8x8xi32>
    %218 = arith.cmpi eq, %97, %217 : vector<8x8xi32>
    %219 = vector.broadcast %191 : vector<8x1xi1> to vector<8x8xi1>
    %220 = arith.andi %218, %219 : vector<8x8xi1>
    %221 = vector.shape_cast %208 : vector<8x1xf32> to vector<8x1xf32>
    %222 = vector.broadcast %221 : vector<8x1xf32> to vector<8x8xf32>
    %223 = arith.select %220, %222, %140 : vector<8x8xi1>, vector<8x8xf32>
    %224 = vector.shape_cast %189 : vector<8x1xf32> to vector<8x1xf32>
    %225 = vector.broadcast %224 : vector<8x1xf32> to vector<8x8xf32>
    %226 = arith.select %220, %225, %143 : vector<8x8xi1>, vector<8x8xf32>
    %227 = vector.shape_cast %210 : vector<8x1xf32> to vector<8x1xf32>
    %228 = vector.broadcast %227 : vector<8x1xf32> to vector<8x8xf32>
    %229 = arith.select %220, %228, %146 : vector<8x8xi1>, vector<8x8xf32>
    %230 = vector.shape_cast %212 : vector<8x1xf32> to vector<8x1xf32>
    %231 = vector.broadcast %230 : vector<8x1xf32> to vector<8x8xf32>
    %232 = arith.select %220, %231, %149 : vector<8x8xi1>, vector<8x8xf32>
    %233 = vector.shape_cast %214 : vector<8x1xf32> to vector<8x1xf32>
    %234 = vector.broadcast %233 : vector<8x1xf32> to vector<8x8xf32>
    %235 = arith.select %220, %234, %152 : vector<8x8xi1>, vector<8x8xf32>
    %236 = vector.shape_cast %216 : vector<8x1xf32> to vector<8x1xf32>
    %237 = vector.broadcast %236 : vector<8x1xf32> to vector<8x8xf32>
    %238 = arith.select %220, %237, %155 : vector<8x8xi1>, vector<8x8xf32>
    %239 = arith.subf %214, %210 : vector<8x1xf32>
    %240 = arith.subf %216, %212 : vector<8x1xf32>
    %241 = arith.mulf %239, %240 : vector<8x1xf32>
    %242 = vector.broadcast %214 : vector<8x1xf32> to vector<8x64xf32>
    %243 = arith.minimumf %242, %84 : vector<8x64xf32>
    %244 = vector.broadcast %210 : vector<8x1xf32> to vector<8x64xf32>
    %245 = arith.maximumf %244, %81 : vector<8x64xf32>
    %246 = arith.subf %243, %245 : vector<8x64xf32>
    %cst_66 = arith.constant 0.000000e+00 : f32
    %cst_67 = arith.constant 1.000000e+00 : f32
    %247 = vector.broadcast %cst_66 : f32 to vector<8x64xf32>
    %248 = arith.maximumf %247, %246 : vector<8x64xf32>
    %249 = vector.broadcast %cst_67 : f32 to vector<8x64xf32>
    %250 = arith.minimumf %249, %248 : vector<8x64xf32>
    %251 = vector.broadcast %216 : vector<8x1xf32> to vector<8x64xf32>
    %252 = arith.minimumf %251, %90 : vector<8x64xf32>
    %253 = vector.broadcast %212 : vector<8x1xf32> to vector<8x64xf32>
    %254 = arith.maximumf %253, %87 : vector<8x64xf32>
    %255 = arith.subf %252, %254 : vector<8x64xf32>
    %cst_68 = arith.constant 0.000000e+00 : f32
    %cst_69 = arith.constant 1.000000e+00 : f32
    %256 = vector.broadcast %cst_68 : f32 to vector<8x64xf32>
    %257 = arith.maximumf %256, %255 : vector<8x64xf32>
    %258 = vector.broadcast %cst_69 : f32 to vector<8x64xf32>
    %259 = arith.minimumf %258, %257 : vector<8x64xf32>
    %260 = arith.mulf %250, %259 : vector<8x64xf32>
    %261 = vector.broadcast %cst_48 : f32 to vector<8x64xf32>
    %262 = arith.mulf %260, %261 : vector<8x64xf32>
    %263 = vector.broadcast %cst_49 : f32 to vector<8x1xf32>
    %264 = arith.mulf %263, %241 : vector<8x1xf32>
    %265 = vector.broadcast %264 : vector<8x1xf32> to vector<8x64xf32>
    %266 = arith.addf %265, %95 : vector<8x64xf32>
    %267 = arith.cmpf oge, %262, %266 : vector<8x64xf32>
    %268 = arith.ori %267, %199 : vector<8x64xi1>
    %cst_70 = arith.constant 0xFF800000 : f32
    %269 = vector.broadcast %cst_70 : f32 to vector<8x64xf32>
    %270 = arith.select %268, %269, %187 : vector<8x64xi1>, vector<8x64xf32>
    %c2_i32 = arith.constant 2 : i32
    %cst_71 = arith.constant dense<0xFF800000> : vector<8xf32>
    %271 = vector.multi_reduction <maximumf>, %270, %cst_71 [1] : vector<8x64xf32> to vector<8xf32>
    %272 = vector.shape_cast %271 : vector<8xf32> to vector<8x1xf32>
    %cst_72 = arith.constant 0.00999999977 : f32
    %273 = vector.broadcast %cst_72 : f32 to vector<8x1xf32>
    %274 = arith.cmpf oge, %272, %273 : vector<8x1xf32>
    %275 = vector.broadcast %272 : vector<8x1xf32> to vector<8x64xf32>
    %276 = arith.cmpf oeq, %270, %275 : vector<8x64xf32>
    %c64_i32_73 = arith.constant 64 : i32
    %277 = vector.broadcast %c64_i32_73 : i32 to vector<8x64xi32>
    %278 = arith.select %276, %96, %277 : vector<8x64xi1>, vector<8x64xi32>
    %cst_74 = arith.constant dense<2147483647> : vector<8xi32>
    %279 = vector.multi_reduction <minsi>, %278, %cst_74 [1] : vector<8x64xi32> to vector<8xi32>
    %280 = vector.shape_cast %279 : vector<8xi32> to vector<8x1xi32>
    %281 = vector.broadcast %280 : vector<8x1xi32> to vector<8x64xi32>
    %282 = arith.cmpi eq, %96, %281 : vector<8x64xi32>
    %283 = vector.shape_cast %282 : vector<8x64xi1> to vector<1x8x64xi1>
    %cst_75 = arith.constant 0.000000e+00 : f32
    %284 = vector.shape_cast %283 : vector<1x8x64xi1> to vector<1x8x64xi1>
    %285 = vector.broadcast %284 : vector<1x8x64xi1> to vector<5x8x64xi1>
    %286 = vector.broadcast %cst_75 : f32 to vector<5x8x64xf32>
    %287 = arith.select %285, %103, %286 : vector<5x8x64xi1>, vector<5x8x64xf32>
    %cst_76 = arith.constant dense<0.000000e+00> : vector<5x8xf32>
    %288 = vector.multi_reduction <add>, %287, %cst_76 [2] : vector<5x8x64xf32> to vector<5x8xf32>
    %289 = vector.shape_cast %288 : vector<5x8xf32> to vector<5x8x1xf32>
    %290 = vector.extract_strided_slice %289 {offsets = [0, 0, 0], sizes = [1, 8, 1], strides = [1, 1, 1]} : vector<5x8x1xf32> to vector<1x8x1xf32>
    %291 = vector.shape_cast %290 : vector<1x8x1xf32> to vector<8x1xf32>
    %292 = vector.extract_strided_slice %289 {offsets = [1, 0, 0], sizes = [1, 8, 1], strides = [1, 1, 1]} : vector<5x8x1xf32> to vector<1x8x1xf32>
    %293 = vector.shape_cast %292 : vector<1x8x1xf32> to vector<8x1xf32>
    %294 = vector.extract_strided_slice %289 {offsets = [2, 0, 0], sizes = [1, 8, 1], strides = [1, 1, 1]} : vector<5x8x1xf32> to vector<1x8x1xf32>
    %295 = vector.shape_cast %294 : vector<1x8x1xf32> to vector<8x1xf32>
    %296 = vector.extract_strided_slice %289 {offsets = [3, 0, 0], sizes = [1, 8, 1], strides = [1, 1, 1]} : vector<5x8x1xf32> to vector<1x8x1xf32>
    %297 = vector.shape_cast %296 : vector<1x8x1xf32> to vector<8x1xf32>
    %298 = vector.extract_strided_slice %289 {offsets = [4, 0, 0], sizes = [1, 8, 1], strides = [1, 1, 1]} : vector<5x8x1xf32> to vector<1x8x1xf32>
    %299 = vector.shape_cast %298 : vector<1x8x1xf32> to vector<8x1xf32>
    %300 = vector.broadcast %c2_i32 : i32 to vector<8x8xi32>
    %301 = arith.cmpi eq, %97, %300 : vector<8x8xi32>
    %302 = vector.broadcast %274 : vector<8x1xi1> to vector<8x8xi1>
    %303 = arith.andi %301, %302 : vector<8x8xi1>
    %304 = vector.shape_cast %291 : vector<8x1xf32> to vector<8x1xf32>
    %305 = vector.broadcast %304 : vector<8x1xf32> to vector<8x8xf32>
    %306 = arith.select %303, %305, %223 : vector<8x8xi1>, vector<8x8xf32>
    %307 = vector.shape_cast %272 : vector<8x1xf32> to vector<8x1xf32>
    %308 = vector.broadcast %307 : vector<8x1xf32> to vector<8x8xf32>
    %309 = arith.select %303, %308, %226 : vector<8x8xi1>, vector<8x8xf32>
    %310 = vector.shape_cast %293 : vector<8x1xf32> to vector<8x1xf32>
    %311 = vector.broadcast %310 : vector<8x1xf32> to vector<8x8xf32>
    %312 = arith.select %303, %311, %229 : vector<8x8xi1>, vector<8x8xf32>
    %313 = vector.shape_cast %295 : vector<8x1xf32> to vector<8x1xf32>
    %314 = vector.broadcast %313 : vector<8x1xf32> to vector<8x8xf32>
    %315 = arith.select %303, %314, %232 : vector<8x8xi1>, vector<8x8xf32>
    %316 = vector.shape_cast %297 : vector<8x1xf32> to vector<8x1xf32>
    %317 = vector.broadcast %316 : vector<8x1xf32> to vector<8x8xf32>
    %318 = arith.select %303, %317, %235 : vector<8x8xi1>, vector<8x8xf32>
    %319 = vector.shape_cast %299 : vector<8x1xf32> to vector<8x1xf32>
    %320 = vector.broadcast %319 : vector<8x1xf32> to vector<8x8xf32>
    %321 = arith.select %303, %320, %238 : vector<8x8xi1>, vector<8x8xf32>
    %322 = arith.subf %297, %293 : vector<8x1xf32>
    %323 = arith.subf %299, %295 : vector<8x1xf32>
    %324 = arith.mulf %322, %323 : vector<8x1xf32>
    %325 = vector.broadcast %297 : vector<8x1xf32> to vector<8x64xf32>
    %326 = arith.minimumf %325, %84 : vector<8x64xf32>
    %327 = vector.broadcast %293 : vector<8x1xf32> to vector<8x64xf32>
    %328 = arith.maximumf %327, %81 : vector<8x64xf32>
    %329 = arith.subf %326, %328 : vector<8x64xf32>
    %cst_77 = arith.constant 0.000000e+00 : f32
    %cst_78 = arith.constant 1.000000e+00 : f32
    %330 = vector.broadcast %cst_77 : f32 to vector<8x64xf32>
    %331 = arith.maximumf %330, %329 : vector<8x64xf32>
    %332 = vector.broadcast %cst_78 : f32 to vector<8x64xf32>
    %333 = arith.minimumf %332, %331 : vector<8x64xf32>
    %334 = vector.broadcast %299 : vector<8x1xf32> to vector<8x64xf32>
    %335 = arith.minimumf %334, %90 : vector<8x64xf32>
    %336 = vector.broadcast %295 : vector<8x1xf32> to vector<8x64xf32>
    %337 = arith.maximumf %336, %87 : vector<8x64xf32>
    %338 = arith.subf %335, %337 : vector<8x64xf32>
    %cst_79 = arith.constant 0.000000e+00 : f32
    %cst_80 = arith.constant 1.000000e+00 : f32
    %339 = vector.broadcast %cst_79 : f32 to vector<8x64xf32>
    %340 = arith.maximumf %339, %338 : vector<8x64xf32>
    %341 = vector.broadcast %cst_80 : f32 to vector<8x64xf32>
    %342 = arith.minimumf %341, %340 : vector<8x64xf32>
    %343 = arith.mulf %333, %342 : vector<8x64xf32>
    %344 = vector.broadcast %cst_48 : f32 to vector<8x64xf32>
    %345 = arith.mulf %343, %344 : vector<8x64xf32>
    %346 = vector.broadcast %cst_49 : f32 to vector<8x1xf32>
    %347 = arith.mulf %346, %324 : vector<8x1xf32>
    %348 = vector.broadcast %347 : vector<8x1xf32> to vector<8x64xf32>
    %349 = arith.addf %348, %95 : vector<8x64xf32>
    %350 = arith.cmpf oge, %345, %349 : vector<8x64xf32>
    %351 = arith.ori %350, %282 : vector<8x64xi1>
    %cst_81 = arith.constant 0xFF800000 : f32
    %352 = vector.broadcast %cst_81 : f32 to vector<8x64xf32>
    %353 = arith.select %351, %352, %270 : vector<8x64xi1>, vector<8x64xf32>
    %c3_i32 = arith.constant 3 : i32
    %cst_82 = arith.constant dense<0xFF800000> : vector<8xf32>
    %354 = vector.multi_reduction <maximumf>, %353, %cst_82 [1] : vector<8x64xf32> to vector<8xf32>
    %355 = vector.shape_cast %354 : vector<8xf32> to vector<8x1xf32>
    %cst_83 = arith.constant 0.00999999977 : f32
    %356 = vector.broadcast %cst_83 : f32 to vector<8x1xf32>
    %357 = arith.cmpf oge, %355, %356 : vector<8x1xf32>
    %358 = vector.broadcast %355 : vector<8x1xf32> to vector<8x64xf32>
    %359 = arith.cmpf oeq, %353, %358 : vector<8x64xf32>
    %c64_i32_84 = arith.constant 64 : i32
    %360 = vector.broadcast %c64_i32_84 : i32 to vector<8x64xi32>
    %361 = arith.select %359, %96, %360 : vector<8x64xi1>, vector<8x64xi32>
    %cst_85 = arith.constant dense<2147483647> : vector<8xi32>
    %362 = vector.multi_reduction <minsi>, %361, %cst_85 [1] : vector<8x64xi32> to vector<8xi32>
    %363 = vector.shape_cast %362 : vector<8xi32> to vector<8x1xi32>
    %364 = vector.broadcast %363 : vector<8x1xi32> to vector<8x64xi32>
    %365 = arith.cmpi eq, %96, %364 : vector<8x64xi32>
    %366 = vector.shape_cast %365 : vector<8x64xi1> to vector<1x8x64xi1>
    %cst_86 = arith.constant 0.000000e+00 : f32
    %367 = vector.shape_cast %366 : vector<1x8x64xi1> to vector<1x8x64xi1>
    %368 = vector.broadcast %367 : vector<1x8x64xi1> to vector<5x8x64xi1>
    %369 = vector.broadcast %cst_86 : f32 to vector<5x8x64xf32>
    %370 = arith.select %368, %103, %369 : vector<5x8x64xi1>, vector<5x8x64xf32>
    %cst_87 = arith.constant dense<0.000000e+00> : vector<5x8xf32>
    %371 = vector.multi_reduction <add>, %370, %cst_87 [2] : vector<5x8x64xf32> to vector<5x8xf32>
    %372 = vector.shape_cast %371 : vector<5x8xf32> to vector<5x8x1xf32>
    %373 = vector.extract_strided_slice %372 {offsets = [0, 0, 0], sizes = [1, 8, 1], strides = [1, 1, 1]} : vector<5x8x1xf32> to vector<1x8x1xf32>
    %374 = vector.shape_cast %373 : vector<1x8x1xf32> to vector<8x1xf32>
    %375 = vector.extract_strided_slice %372 {offsets = [1, 0, 0], sizes = [1, 8, 1], strides = [1, 1, 1]} : vector<5x8x1xf32> to vector<1x8x1xf32>
    %376 = vector.shape_cast %375 : vector<1x8x1xf32> to vector<8x1xf32>
    %377 = vector.extract_strided_slice %372 {offsets = [2, 0, 0], sizes = [1, 8, 1], strides = [1, 1, 1]} : vector<5x8x1xf32> to vector<1x8x1xf32>
    %378 = vector.shape_cast %377 : vector<1x8x1xf32> to vector<8x1xf32>
    %379 = vector.extract_strided_slice %372 {offsets = [3, 0, 0], sizes = [1, 8, 1], strides = [1, 1, 1]} : vector<5x8x1xf32> to vector<1x8x1xf32>
    %380 = vector.shape_cast %379 : vector<1x8x1xf32> to vector<8x1xf32>
    %381 = vector.extract_strided_slice %372 {offsets = [4, 0, 0], sizes = [1, 8, 1], strides = [1, 1, 1]} : vector<5x8x1xf32> to vector<1x8x1xf32>
    %382 = vector.shape_cast %381 : vector<1x8x1xf32> to vector<8x1xf32>
    %383 = vector.broadcast %c3_i32 : i32 to vector<8x8xi32>
    %384 = arith.cmpi eq, %97, %383 : vector<8x8xi32>
    %385 = vector.broadcast %357 : vector<8x1xi1> to vector<8x8xi1>
    %386 = arith.andi %384, %385 : vector<8x8xi1>
    %387 = vector.shape_cast %374 : vector<8x1xf32> to vector<8x1xf32>
    %388 = vector.broadcast %387 : vector<8x1xf32> to vector<8x8xf32>
    %389 = arith.select %386, %388, %306 : vector<8x8xi1>, vector<8x8xf32>
    %390 = vector.shape_cast %355 : vector<8x1xf32> to vector<8x1xf32>
    %391 = vector.broadcast %390 : vector<8x1xf32> to vector<8x8xf32>
    %392 = arith.select %386, %391, %309 : vector<8x8xi1>, vector<8x8xf32>
    %393 = vector.shape_cast %376 : vector<8x1xf32> to vector<8x1xf32>
    %394 = vector.broadcast %393 : vector<8x1xf32> to vector<8x8xf32>
    %395 = arith.select %386, %394, %312 : vector<8x8xi1>, vector<8x8xf32>
    %396 = vector.shape_cast %378 : vector<8x1xf32> to vector<8x1xf32>
    %397 = vector.broadcast %396 : vector<8x1xf32> to vector<8x8xf32>
    %398 = arith.select %386, %397, %315 : vector<8x8xi1>, vector<8x8xf32>
    %399 = vector.shape_cast %380 : vector<8x1xf32> to vector<8x1xf32>
    %400 = vector.broadcast %399 : vector<8x1xf32> to vector<8x8xf32>
    %401 = arith.select %386, %400, %318 : vector<8x8xi1>, vector<8x8xf32>
    %402 = vector.shape_cast %382 : vector<8x1xf32> to vector<8x1xf32>
    %403 = vector.broadcast %402 : vector<8x1xf32> to vector<8x8xf32>
    %404 = arith.select %386, %403, %321 : vector<8x8xi1>, vector<8x8xf32>
    %405 = arith.subf %380, %376 : vector<8x1xf32>
    %406 = arith.subf %382, %378 : vector<8x1xf32>
    %407 = arith.mulf %405, %406 : vector<8x1xf32>
    %408 = vector.broadcast %380 : vector<8x1xf32> to vector<8x64xf32>
    %409 = arith.minimumf %408, %84 : vector<8x64xf32>
    %410 = vector.broadcast %376 : vector<8x1xf32> to vector<8x64xf32>
    %411 = arith.maximumf %410, %81 : vector<8x64xf32>
    %412 = arith.subf %409, %411 : vector<8x64xf32>
    %cst_88 = arith.constant 0.000000e+00 : f32
    %cst_89 = arith.constant 1.000000e+00 : f32
    %413 = vector.broadcast %cst_88 : f32 to vector<8x64xf32>
    %414 = arith.maximumf %413, %412 : vector<8x64xf32>
    %415 = vector.broadcast %cst_89 : f32 to vector<8x64xf32>
    %416 = arith.minimumf %415, %414 : vector<8x64xf32>
    %417 = vector.broadcast %382 : vector<8x1xf32> to vector<8x64xf32>
    %418 = arith.minimumf %417, %90 : vector<8x64xf32>
    %419 = vector.broadcast %378 : vector<8x1xf32> to vector<8x64xf32>
    %420 = arith.maximumf %419, %87 : vector<8x64xf32>
    %421 = arith.subf %418, %420 : vector<8x64xf32>
    %cst_90 = arith.constant 0.000000e+00 : f32
    %cst_91 = arith.constant 1.000000e+00 : f32
    %422 = vector.broadcast %cst_90 : f32 to vector<8x64xf32>
    %423 = arith.maximumf %422, %421 : vector<8x64xf32>
    %424 = vector.broadcast %cst_91 : f32 to vector<8x64xf32>
    %425 = arith.minimumf %424, %423 : vector<8x64xf32>
    %426 = arith.mulf %416, %425 : vector<8x64xf32>
    %427 = vector.broadcast %cst_48 : f32 to vector<8x64xf32>
    %428 = arith.mulf %426, %427 : vector<8x64xf32>
    %429 = vector.broadcast %cst_49 : f32 to vector<8x1xf32>
    %430 = arith.mulf %429, %407 : vector<8x1xf32>
    %431 = vector.broadcast %430 : vector<8x1xf32> to vector<8x64xf32>
    %432 = arith.addf %431, %95 : vector<8x64xf32>
    %433 = arith.cmpf oge, %428, %432 : vector<8x64xf32>
    %434 = arith.ori %433, %365 : vector<8x64xi1>
    %cst_92 = arith.constant 0xFF800000 : f32
    %435 = vector.broadcast %cst_92 : f32 to vector<8x64xf32>
    %436 = arith.select %434, %435, %353 : vector<8x64xi1>, vector<8x64xf32>
    %c4_i32 = arith.constant 4 : i32
    %cst_93 = arith.constant dense<0xFF800000> : vector<8xf32>
    %437 = vector.multi_reduction <maximumf>, %436, %cst_93 [1] : vector<8x64xf32> to vector<8xf32>
    %438 = vector.shape_cast %437 : vector<8xf32> to vector<8x1xf32>
    %cst_94 = arith.constant 0.00999999977 : f32
    %439 = vector.broadcast %cst_94 : f32 to vector<8x1xf32>
    %440 = arith.cmpf oge, %438, %439 : vector<8x1xf32>
    %441 = vector.broadcast %438 : vector<8x1xf32> to vector<8x64xf32>
    %442 = arith.cmpf oeq, %436, %441 : vector<8x64xf32>
    %c64_i32_95 = arith.constant 64 : i32
    %443 = vector.broadcast %c64_i32_95 : i32 to vector<8x64xi32>
    %444 = arith.select %442, %96, %443 : vector<8x64xi1>, vector<8x64xi32>
    %cst_96 = arith.constant dense<2147483647> : vector<8xi32>
    %445 = vector.multi_reduction <minsi>, %444, %cst_96 [1] : vector<8x64xi32> to vector<8xi32>
    %446 = vector.shape_cast %445 : vector<8xi32> to vector<8x1xi32>
    %447 = vector.broadcast %446 : vector<8x1xi32> to vector<8x64xi32>
    %448 = arith.cmpi eq, %96, %447 : vector<8x64xi32>
    %449 = vector.shape_cast %448 : vector<8x64xi1> to vector<1x8x64xi1>
    %cst_97 = arith.constant 0.000000e+00 : f32
    %450 = vector.shape_cast %449 : vector<1x8x64xi1> to vector<1x8x64xi1>
    %451 = vector.broadcast %450 : vector<1x8x64xi1> to vector<5x8x64xi1>
    %452 = vector.broadcast %cst_97 : f32 to vector<5x8x64xf32>
    %453 = arith.select %451, %103, %452 : vector<5x8x64xi1>, vector<5x8x64xf32>
    %cst_98 = arith.constant dense<0.000000e+00> : vector<5x8xf32>
    %454 = vector.multi_reduction <add>, %453, %cst_98 [2] : vector<5x8x64xf32> to vector<5x8xf32>
    %455 = vector.shape_cast %454 : vector<5x8xf32> to vector<5x8x1xf32>
    %456 = vector.extract_strided_slice %455 {offsets = [0, 0, 0], sizes = [1, 8, 1], strides = [1, 1, 1]} : vector<5x8x1xf32> to vector<1x8x1xf32>
    %457 = vector.shape_cast %456 : vector<1x8x1xf32> to vector<8x1xf32>
    %458 = vector.extract_strided_slice %455 {offsets = [1, 0, 0], sizes = [1, 8, 1], strides = [1, 1, 1]} : vector<5x8x1xf32> to vector<1x8x1xf32>
    %459 = vector.shape_cast %458 : vector<1x8x1xf32> to vector<8x1xf32>
    %460 = vector.extract_strided_slice %455 {offsets = [2, 0, 0], sizes = [1, 8, 1], strides = [1, 1, 1]} : vector<5x8x1xf32> to vector<1x8x1xf32>
    %461 = vector.shape_cast %460 : vector<1x8x1xf32> to vector<8x1xf32>
    %462 = vector.extract_strided_slice %455 {offsets = [3, 0, 0], sizes = [1, 8, 1], strides = [1, 1, 1]} : vector<5x8x1xf32> to vector<1x8x1xf32>
    %463 = vector.shape_cast %462 : vector<1x8x1xf32> to vector<8x1xf32>
    %464 = vector.extract_strided_slice %455 {offsets = [4, 0, 0], sizes = [1, 8, 1], strides = [1, 1, 1]} : vector<5x8x1xf32> to vector<1x8x1xf32>
    %465 = vector.shape_cast %464 : vector<1x8x1xf32> to vector<8x1xf32>
    %466 = vector.broadcast %c4_i32 : i32 to vector<8x8xi32>
    %467 = arith.cmpi eq, %97, %466 : vector<8x8xi32>
    %468 = vector.broadcast %440 : vector<8x1xi1> to vector<8x8xi1>
    %469 = arith.andi %467, %468 : vector<8x8xi1>
    %470 = vector.shape_cast %457 : vector<8x1xf32> to vector<8x1xf32>
    %471 = vector.broadcast %470 : vector<8x1xf32> to vector<8x8xf32>
    %472 = arith.select %469, %471, %389 : vector<8x8xi1>, vector<8x8xf32>
    %473 = vector.shape_cast %438 : vector<8x1xf32> to vector<8x1xf32>
    %474 = vector.broadcast %473 : vector<8x1xf32> to vector<8x8xf32>
    %475 = arith.select %469, %474, %392 : vector<8x8xi1>, vector<8x8xf32>
    %476 = vector.shape_cast %459 : vector<8x1xf32> to vector<8x1xf32>
    %477 = vector.broadcast %476 : vector<8x1xf32> to vector<8x8xf32>
    %478 = arith.select %469, %477, %395 : vector<8x8xi1>, vector<8x8xf32>
    %479 = vector.shape_cast %461 : vector<8x1xf32> to vector<8x1xf32>
    %480 = vector.broadcast %479 : vector<8x1xf32> to vector<8x8xf32>
    %481 = arith.select %469, %480, %398 : vector<8x8xi1>, vector<8x8xf32>
    %482 = vector.shape_cast %463 : vector<8x1xf32> to vector<8x1xf32>
    %483 = vector.broadcast %482 : vector<8x1xf32> to vector<8x8xf32>
    %484 = arith.select %469, %483, %401 : vector<8x8xi1>, vector<8x8xf32>
    %485 = vector.shape_cast %465 : vector<8x1xf32> to vector<8x1xf32>
    %486 = vector.broadcast %485 : vector<8x1xf32> to vector<8x8xf32>
    %487 = arith.select %469, %486, %404 : vector<8x8xi1>, vector<8x8xf32>
    %488 = arith.subf %463, %459 : vector<8x1xf32>
    %489 = arith.subf %465, %461 : vector<8x1xf32>
    %490 = arith.mulf %488, %489 : vector<8x1xf32>
    %491 = vector.broadcast %463 : vector<8x1xf32> to vector<8x64xf32>
    %492 = arith.minimumf %491, %84 : vector<8x64xf32>
    %493 = vector.broadcast %459 : vector<8x1xf32> to vector<8x64xf32>
    %494 = arith.maximumf %493, %81 : vector<8x64xf32>
    %495 = arith.subf %492, %494 : vector<8x64xf32>
    %cst_99 = arith.constant 0.000000e+00 : f32
    %cst_100 = arith.constant 1.000000e+00 : f32
    %496 = vector.broadcast %cst_99 : f32 to vector<8x64xf32>
    %497 = arith.maximumf %496, %495 : vector<8x64xf32>
    %498 = vector.broadcast %cst_100 : f32 to vector<8x64xf32>
    %499 = arith.minimumf %498, %497 : vector<8x64xf32>
    %500 = vector.broadcast %465 : vector<8x1xf32> to vector<8x64xf32>
    %501 = arith.minimumf %500, %90 : vector<8x64xf32>
    %502 = vector.broadcast %461 : vector<8x1xf32> to vector<8x64xf32>
    %503 = arith.maximumf %502, %87 : vector<8x64xf32>
    %504 = arith.subf %501, %503 : vector<8x64xf32>
    %cst_101 = arith.constant 0.000000e+00 : f32
    %cst_102 = arith.constant 1.000000e+00 : f32
    %505 = vector.broadcast %cst_101 : f32 to vector<8x64xf32>
    %506 = arith.maximumf %505, %504 : vector<8x64xf32>
    %507 = vector.broadcast %cst_102 : f32 to vector<8x64xf32>
    %508 = arith.minimumf %507, %506 : vector<8x64xf32>
    %509 = arith.mulf %499, %508 : vector<8x64xf32>
    %510 = vector.broadcast %cst_48 : f32 to vector<8x64xf32>
    %511 = arith.mulf %509, %510 : vector<8x64xf32>
    %512 = vector.broadcast %cst_49 : f32 to vector<8x1xf32>
    %513 = arith.mulf %512, %490 : vector<8x1xf32>
    %514 = vector.broadcast %513 : vector<8x1xf32> to vector<8x64xf32>
    %515 = arith.addf %514, %95 : vector<8x64xf32>
    %516 = arith.cmpf oge, %511, %515 : vector<8x64xf32>
    %517 = arith.ori %516, %448 : vector<8x64xi1>
    %cst_103 = arith.constant 0xFF800000 : f32
    %518 = vector.broadcast %cst_103 : f32 to vector<8x64xf32>
    %519 = arith.select %517, %518, %436 : vector<8x64xi1>, vector<8x64xf32>
    %c5_i32 = arith.constant 5 : i32
    %cst_104 = arith.constant dense<0xFF800000> : vector<8xf32>
    %520 = vector.multi_reduction <maximumf>, %519, %cst_104 [1] : vector<8x64xf32> to vector<8xf32>
    %521 = vector.shape_cast %520 : vector<8xf32> to vector<8x1xf32>
    %cst_105 = arith.constant 0.00999999977 : f32
    %522 = vector.broadcast %cst_105 : f32 to vector<8x1xf32>
    %523 = arith.cmpf oge, %521, %522 : vector<8x1xf32>
    %524 = vector.broadcast %521 : vector<8x1xf32> to vector<8x64xf32>
    %525 = arith.cmpf oeq, %519, %524 : vector<8x64xf32>
    %c64_i32_106 = arith.constant 64 : i32
    %526 = vector.broadcast %c64_i32_106 : i32 to vector<8x64xi32>
    %527 = arith.select %525, %96, %526 : vector<8x64xi1>, vector<8x64xi32>
    %cst_107 = arith.constant dense<2147483647> : vector<8xi32>
    %528 = vector.multi_reduction <minsi>, %527, %cst_107 [1] : vector<8x64xi32> to vector<8xi32>
    %529 = vector.shape_cast %528 : vector<8xi32> to vector<8x1xi32>
    %530 = vector.broadcast %529 : vector<8x1xi32> to vector<8x64xi32>
    %531 = arith.cmpi eq, %96, %530 : vector<8x64xi32>
    %532 = vector.shape_cast %531 : vector<8x64xi1> to vector<1x8x64xi1>
    %cst_108 = arith.constant 0.000000e+00 : f32
    %533 = vector.shape_cast %532 : vector<1x8x64xi1> to vector<1x8x64xi1>
    %534 = vector.broadcast %533 : vector<1x8x64xi1> to vector<5x8x64xi1>
    %535 = vector.broadcast %cst_108 : f32 to vector<5x8x64xf32>
    %536 = arith.select %534, %103, %535 : vector<5x8x64xi1>, vector<5x8x64xf32>
    %cst_109 = arith.constant dense<0.000000e+00> : vector<5x8xf32>
    %537 = vector.multi_reduction <add>, %536, %cst_109 [2] : vector<5x8x64xf32> to vector<5x8xf32>
    %538 = vector.shape_cast %537 : vector<5x8xf32> to vector<5x8x1xf32>
    %539 = vector.extract_strided_slice %538 {offsets = [0, 0, 0], sizes = [1, 8, 1], strides = [1, 1, 1]} : vector<5x8x1xf32> to vector<1x8x1xf32>
    %540 = vector.shape_cast %539 : vector<1x8x1xf32> to vector<8x1xf32>
    %541 = vector.extract_strided_slice %538 {offsets = [1, 0, 0], sizes = [1, 8, 1], strides = [1, 1, 1]} : vector<5x8x1xf32> to vector<1x8x1xf32>
    %542 = vector.shape_cast %541 : vector<1x8x1xf32> to vector<8x1xf32>
    %543 = vector.extract_strided_slice %538 {offsets = [2, 0, 0], sizes = [1, 8, 1], strides = [1, 1, 1]} : vector<5x8x1xf32> to vector<1x8x1xf32>
    %544 = vector.shape_cast %543 : vector<1x8x1xf32> to vector<8x1xf32>
    %545 = vector.extract_strided_slice %538 {offsets = [3, 0, 0], sizes = [1, 8, 1], strides = [1, 1, 1]} : vector<5x8x1xf32> to vector<1x8x1xf32>
    %546 = vector.shape_cast %545 : vector<1x8x1xf32> to vector<8x1xf32>
    %547 = vector.extract_strided_slice %538 {offsets = [4, 0, 0], sizes = [1, 8, 1], strides = [1, 1, 1]} : vector<5x8x1xf32> to vector<1x8x1xf32>
    %548 = vector.shape_cast %547 : vector<1x8x1xf32> to vector<8x1xf32>
    %549 = vector.broadcast %c5_i32 : i32 to vector<8x8xi32>
    %550 = arith.cmpi eq, %97, %549 : vector<8x8xi32>
    %551 = vector.broadcast %523 : vector<8x1xi1> to vector<8x8xi1>
    %552 = arith.andi %550, %551 : vector<8x8xi1>
    %553 = vector.shape_cast %540 : vector<8x1xf32> to vector<8x1xf32>
    %554 = vector.broadcast %553 : vector<8x1xf32> to vector<8x8xf32>
    %555 = arith.select %552, %554, %472 : vector<8x8xi1>, vector<8x8xf32>
    %556 = vector.shape_cast %521 : vector<8x1xf32> to vector<8x1xf32>
    %557 = vector.broadcast %556 : vector<8x1xf32> to vector<8x8xf32>
    %558 = arith.select %552, %557, %475 : vector<8x8xi1>, vector<8x8xf32>
    %559 = vector.shape_cast %542 : vector<8x1xf32> to vector<8x1xf32>
    %560 = vector.broadcast %559 : vector<8x1xf32> to vector<8x8xf32>
    %561 = arith.select %552, %560, %478 : vector<8x8xi1>, vector<8x8xf32>
    %562 = vector.shape_cast %544 : vector<8x1xf32> to vector<8x1xf32>
    %563 = vector.broadcast %562 : vector<8x1xf32> to vector<8x8xf32>
    %564 = arith.select %552, %563, %481 : vector<8x8xi1>, vector<8x8xf32>
    %565 = vector.shape_cast %546 : vector<8x1xf32> to vector<8x1xf32>
    %566 = vector.broadcast %565 : vector<8x1xf32> to vector<8x8xf32>
    %567 = arith.select %552, %566, %484 : vector<8x8xi1>, vector<8x8xf32>
    %568 = vector.shape_cast %548 : vector<8x1xf32> to vector<8x1xf32>
    %569 = vector.broadcast %568 : vector<8x1xf32> to vector<8x8xf32>
    %570 = arith.select %552, %569, %487 : vector<8x8xi1>, vector<8x8xf32>
    %571 = arith.subf %546, %542 : vector<8x1xf32>
    %572 = arith.subf %548, %544 : vector<8x1xf32>
    %573 = arith.mulf %571, %572 : vector<8x1xf32>
    %574 = vector.broadcast %546 : vector<8x1xf32> to vector<8x64xf32>
    %575 = arith.minimumf %574, %84 : vector<8x64xf32>
    %576 = vector.broadcast %542 : vector<8x1xf32> to vector<8x64xf32>
    %577 = arith.maximumf %576, %81 : vector<8x64xf32>
    %578 = arith.subf %575, %577 : vector<8x64xf32>
    %cst_110 = arith.constant 0.000000e+00 : f32
    %cst_111 = arith.constant 1.000000e+00 : f32
    %579 = vector.broadcast %cst_110 : f32 to vector<8x64xf32>
    %580 = arith.maximumf %579, %578 : vector<8x64xf32>
    %581 = vector.broadcast %cst_111 : f32 to vector<8x64xf32>
    %582 = arith.minimumf %581, %580 : vector<8x64xf32>
    %583 = vector.broadcast %548 : vector<8x1xf32> to vector<8x64xf32>
    %584 = arith.minimumf %583, %90 : vector<8x64xf32>
    %585 = vector.broadcast %544 : vector<8x1xf32> to vector<8x64xf32>
    %586 = arith.maximumf %585, %87 : vector<8x64xf32>
    %587 = arith.subf %584, %586 : vector<8x64xf32>
    %cst_112 = arith.constant 0.000000e+00 : f32
    %cst_113 = arith.constant 1.000000e+00 : f32
    %588 = vector.broadcast %cst_112 : f32 to vector<8x64xf32>
    %589 = arith.maximumf %588, %587 : vector<8x64xf32>
    %590 = vector.broadcast %cst_113 : f32 to vector<8x64xf32>
    %591 = arith.minimumf %590, %589 : vector<8x64xf32>
    %592 = arith.mulf %582, %591 : vector<8x64xf32>
    %593 = vector.broadcast %cst_48 : f32 to vector<8x64xf32>
    %594 = arith.mulf %592, %593 : vector<8x64xf32>
    %595 = vector.broadcast %cst_49 : f32 to vector<8x1xf32>
    %596 = arith.mulf %595, %573 : vector<8x1xf32>
    %597 = vector.broadcast %596 : vector<8x1xf32> to vector<8x64xf32>
    %598 = arith.addf %597, %95 : vector<8x64xf32>
    %599 = arith.cmpf oge, %594, %598 : vector<8x64xf32>
    %600 = arith.ori %599, %531 : vector<8x64xi1>
    %cst_114 = arith.constant 0xFF800000 : f32
    %601 = vector.broadcast %cst_114 : f32 to vector<8x64xf32>
    %602 = arith.select %600, %601, %519 : vector<8x64xi1>, vector<8x64xf32>
    %c6_i32 = arith.constant 6 : i32
    %cst_115 = arith.constant dense<0xFF800000> : vector<8xf32>
    %603 = vector.multi_reduction <maximumf>, %602, %cst_115 [1] : vector<8x64xf32> to vector<8xf32>
    %604 = vector.shape_cast %603 : vector<8xf32> to vector<8x1xf32>
    %cst_116 = arith.constant 0.00999999977 : f32
    %605 = vector.broadcast %cst_116 : f32 to vector<8x1xf32>
    %606 = arith.cmpf oge, %604, %605 : vector<8x1xf32>
    %607 = vector.broadcast %604 : vector<8x1xf32> to vector<8x64xf32>
    %608 = arith.cmpf oeq, %602, %607 : vector<8x64xf32>
    %c64_i32_117 = arith.constant 64 : i32
    %609 = vector.broadcast %c64_i32_117 : i32 to vector<8x64xi32>
    %610 = arith.select %608, %96, %609 : vector<8x64xi1>, vector<8x64xi32>
    %cst_118 = arith.constant dense<2147483647> : vector<8xi32>
    %611 = vector.multi_reduction <minsi>, %610, %cst_118 [1] : vector<8x64xi32> to vector<8xi32>
    %612 = vector.shape_cast %611 : vector<8xi32> to vector<8x1xi32>
    %613 = vector.broadcast %612 : vector<8x1xi32> to vector<8x64xi32>
    %614 = arith.cmpi eq, %96, %613 : vector<8x64xi32>
    %615 = vector.shape_cast %614 : vector<8x64xi1> to vector<1x8x64xi1>
    %cst_119 = arith.constant 0.000000e+00 : f32
    %616 = vector.shape_cast %615 : vector<1x8x64xi1> to vector<1x8x64xi1>
    %617 = vector.broadcast %616 : vector<1x8x64xi1> to vector<5x8x64xi1>
    %618 = vector.broadcast %cst_119 : f32 to vector<5x8x64xf32>
    %619 = arith.select %617, %103, %618 : vector<5x8x64xi1>, vector<5x8x64xf32>
    %cst_120 = arith.constant dense<0.000000e+00> : vector<5x8xf32>
    %620 = vector.multi_reduction <add>, %619, %cst_120 [2] : vector<5x8x64xf32> to vector<5x8xf32>
    %621 = vector.shape_cast %620 : vector<5x8xf32> to vector<5x8x1xf32>
    %622 = vector.extract_strided_slice %621 {offsets = [0, 0, 0], sizes = [1, 8, 1], strides = [1, 1, 1]} : vector<5x8x1xf32> to vector<1x8x1xf32>
    %623 = vector.shape_cast %622 : vector<1x8x1xf32> to vector<8x1xf32>
    %624 = vector.extract_strided_slice %621 {offsets = [1, 0, 0], sizes = [1, 8, 1], strides = [1, 1, 1]} : vector<5x8x1xf32> to vector<1x8x1xf32>
    %625 = vector.shape_cast %624 : vector<1x8x1xf32> to vector<8x1xf32>
    %626 = vector.extract_strided_slice %621 {offsets = [2, 0, 0], sizes = [1, 8, 1], strides = [1, 1, 1]} : vector<5x8x1xf32> to vector<1x8x1xf32>
    %627 = vector.shape_cast %626 : vector<1x8x1xf32> to vector<8x1xf32>
    %628 = vector.extract_strided_slice %621 {offsets = [3, 0, 0], sizes = [1, 8, 1], strides = [1, 1, 1]} : vector<5x8x1xf32> to vector<1x8x1xf32>
    %629 = vector.shape_cast %628 : vector<1x8x1xf32> to vector<8x1xf32>
    %630 = vector.extract_strided_slice %621 {offsets = [4, 0, 0], sizes = [1, 8, 1], strides = [1, 1, 1]} : vector<5x8x1xf32> to vector<1x8x1xf32>
    %631 = vector.shape_cast %630 : vector<1x8x1xf32> to vector<8x1xf32>
    %632 = vector.broadcast %c6_i32 : i32 to vector<8x8xi32>
    %633 = arith.cmpi eq, %97, %632 : vector<8x8xi32>
    %634 = vector.broadcast %606 : vector<8x1xi1> to vector<8x8xi1>
    %635 = arith.andi %633, %634 : vector<8x8xi1>
    %636 = vector.shape_cast %623 : vector<8x1xf32> to vector<8x1xf32>
    %637 = vector.broadcast %636 : vector<8x1xf32> to vector<8x8xf32>
    %638 = arith.select %635, %637, %555 : vector<8x8xi1>, vector<8x8xf32>
    %639 = vector.shape_cast %604 : vector<8x1xf32> to vector<8x1xf32>
    %640 = vector.broadcast %639 : vector<8x1xf32> to vector<8x8xf32>
    %641 = arith.select %635, %640, %558 : vector<8x8xi1>, vector<8x8xf32>
    %642 = vector.shape_cast %625 : vector<8x1xf32> to vector<8x1xf32>
    %643 = vector.broadcast %642 : vector<8x1xf32> to vector<8x8xf32>
    %644 = arith.select %635, %643, %561 : vector<8x8xi1>, vector<8x8xf32>
    %645 = vector.shape_cast %627 : vector<8x1xf32> to vector<8x1xf32>
    %646 = vector.broadcast %645 : vector<8x1xf32> to vector<8x8xf32>
    %647 = arith.select %635, %646, %564 : vector<8x8xi1>, vector<8x8xf32>
    %648 = vector.shape_cast %629 : vector<8x1xf32> to vector<8x1xf32>
    %649 = vector.broadcast %648 : vector<8x1xf32> to vector<8x8xf32>
    %650 = arith.select %635, %649, %567 : vector<8x8xi1>, vector<8x8xf32>
    %651 = vector.shape_cast %631 : vector<8x1xf32> to vector<8x1xf32>
    %652 = vector.broadcast %651 : vector<8x1xf32> to vector<8x8xf32>
    %653 = arith.select %635, %652, %570 : vector<8x8xi1>, vector<8x8xf32>
    %654 = arith.subf %629, %625 : vector<8x1xf32>
    %655 = arith.subf %631, %627 : vector<8x1xf32>
    %656 = arith.mulf %654, %655 : vector<8x1xf32>
    %657 = vector.broadcast %629 : vector<8x1xf32> to vector<8x64xf32>
    %658 = arith.minimumf %657, %84 : vector<8x64xf32>
    %659 = vector.broadcast %625 : vector<8x1xf32> to vector<8x64xf32>
    %660 = arith.maximumf %659, %81 : vector<8x64xf32>
    %661 = arith.subf %658, %660 : vector<8x64xf32>
    %cst_121 = arith.constant 0.000000e+00 : f32
    %cst_122 = arith.constant 1.000000e+00 : f32
    %662 = vector.broadcast %cst_121 : f32 to vector<8x64xf32>
    %663 = arith.maximumf %662, %661 : vector<8x64xf32>
    %664 = vector.broadcast %cst_122 : f32 to vector<8x64xf32>
    %665 = arith.minimumf %664, %663 : vector<8x64xf32>
    %666 = vector.broadcast %631 : vector<8x1xf32> to vector<8x64xf32>
    %667 = arith.minimumf %666, %90 : vector<8x64xf32>
    %668 = vector.broadcast %627 : vector<8x1xf32> to vector<8x64xf32>
    %669 = arith.maximumf %668, %87 : vector<8x64xf32>
    %670 = arith.subf %667, %669 : vector<8x64xf32>
    %cst_123 = arith.constant 0.000000e+00 : f32
    %cst_124 = arith.constant 1.000000e+00 : f32
    %671 = vector.broadcast %cst_123 : f32 to vector<8x64xf32>
    %672 = arith.maximumf %671, %670 : vector<8x64xf32>
    %673 = vector.broadcast %cst_124 : f32 to vector<8x64xf32>
    %674 = arith.minimumf %673, %672 : vector<8x64xf32>
    %675 = arith.mulf %665, %674 : vector<8x64xf32>
    %676 = vector.broadcast %cst_48 : f32 to vector<8x64xf32>
    %677 = arith.mulf %675, %676 : vector<8x64xf32>
    %678 = vector.broadcast %cst_49 : f32 to vector<8x1xf32>
    %679 = arith.mulf %678, %656 : vector<8x1xf32>
    %680 = vector.broadcast %679 : vector<8x1xf32> to vector<8x64xf32>
    %681 = arith.addf %680, %95 : vector<8x64xf32>
    %682 = arith.cmpf oge, %677, %681 : vector<8x64xf32>
    %683 = arith.ori %682, %614 : vector<8x64xi1>
    %cst_125 = arith.constant 0xFF800000 : f32
    %684 = vector.broadcast %cst_125 : f32 to vector<8x64xf32>
    %685 = arith.select %683, %684, %602 : vector<8x64xi1>, vector<8x64xf32>
    %c7_i32 = arith.constant 7 : i32
    %cst_126 = arith.constant dense<0xFF800000> : vector<8xf32>
    %686 = vector.multi_reduction <maximumf>, %685, %cst_126 [1] : vector<8x64xf32> to vector<8xf32>
    %687 = vector.shape_cast %686 : vector<8xf32> to vector<8x1xf32>
    %cst_127 = arith.constant 0.00999999977 : f32
    %688 = vector.broadcast %cst_127 : f32 to vector<8x1xf32>
    %689 = arith.cmpf oge, %687, %688 : vector<8x1xf32>
    %690 = vector.broadcast %687 : vector<8x1xf32> to vector<8x64xf32>
    %691 = arith.cmpf oeq, %685, %690 : vector<8x64xf32>
    %c64_i32_128 = arith.constant 64 : i32
    %692 = vector.broadcast %c64_i32_128 : i32 to vector<8x64xi32>
    %693 = arith.select %691, %96, %692 : vector<8x64xi1>, vector<8x64xi32>
    %cst_129 = arith.constant dense<2147483647> : vector<8xi32>
    %694 = vector.multi_reduction <minsi>, %693, %cst_129 [1] : vector<8x64xi32> to vector<8xi32>
    %695 = vector.shape_cast %694 : vector<8xi32> to vector<8x1xi32>
    %696 = vector.broadcast %695 : vector<8x1xi32> to vector<8x64xi32>
    %697 = arith.cmpi eq, %96, %696 : vector<8x64xi32>
    %698 = vector.shape_cast %697 : vector<8x64xi1> to vector<1x8x64xi1>
    %cst_130 = arith.constant 0.000000e+00 : f32
    %699 = vector.shape_cast %698 : vector<1x8x64xi1> to vector<1x8x64xi1>
    %700 = vector.broadcast %699 : vector<1x8x64xi1> to vector<5x8x64xi1>
    %701 = vector.broadcast %cst_130 : f32 to vector<5x8x64xf32>
    %702 = arith.select %700, %103, %701 : vector<5x8x64xi1>, vector<5x8x64xf32>
    %cst_131 = arith.constant dense<0.000000e+00> : vector<5x8xf32>
    %703 = vector.multi_reduction <add>, %702, %cst_131 [2] : vector<5x8x64xf32> to vector<5x8xf32>
    %704 = vector.shape_cast %703 : vector<5x8xf32> to vector<5x8x1xf32>
    %705 = vector.extract_strided_slice %704 {offsets = [0, 0, 0], sizes = [1, 8, 1], strides = [1, 1, 1]} : vector<5x8x1xf32> to vector<1x8x1xf32>
    %706 = vector.shape_cast %705 : vector<1x8x1xf32> to vector<8x1xf32>
    %707 = vector.extract_strided_slice %704 {offsets = [1, 0, 0], sizes = [1, 8, 1], strides = [1, 1, 1]} : vector<5x8x1xf32> to vector<1x8x1xf32>
    %708 = vector.shape_cast %707 : vector<1x8x1xf32> to vector<8x1xf32>
    %709 = vector.extract_strided_slice %704 {offsets = [2, 0, 0], sizes = [1, 8, 1], strides = [1, 1, 1]} : vector<5x8x1xf32> to vector<1x8x1xf32>
    %710 = vector.shape_cast %709 : vector<1x8x1xf32> to vector<8x1xf32>
    %711 = vector.extract_strided_slice %704 {offsets = [3, 0, 0], sizes = [1, 8, 1], strides = [1, 1, 1]} : vector<5x8x1xf32> to vector<1x8x1xf32>
    %712 = vector.shape_cast %711 : vector<1x8x1xf32> to vector<8x1xf32>
    %713 = vector.extract_strided_slice %704 {offsets = [4, 0, 0], sizes = [1, 8, 1], strides = [1, 1, 1]} : vector<5x8x1xf32> to vector<1x8x1xf32>
    %714 = vector.shape_cast %713 : vector<1x8x1xf32> to vector<8x1xf32>
    %715 = vector.broadcast %c7_i32 : i32 to vector<8x8xi32>
    %716 = arith.cmpi eq, %97, %715 : vector<8x8xi32>
    %717 = vector.broadcast %689 : vector<8x1xi1> to vector<8x8xi1>
    %718 = arith.andi %716, %717 : vector<8x8xi1>
    %719 = vector.shape_cast %706 : vector<8x1xf32> to vector<8x1xf32>
    %720 = vector.broadcast %719 : vector<8x1xf32> to vector<8x8xf32>
    %721 = arith.select %718, %720, %638 : vector<8x8xi1>, vector<8x8xf32>
    %722 = vector.shape_cast %687 : vector<8x1xf32> to vector<8x1xf32>
    %723 = vector.broadcast %722 : vector<8x1xf32> to vector<8x8xf32>
    %724 = arith.select %718, %723, %641 : vector<8x8xi1>, vector<8x8xf32>
    %725 = vector.shape_cast %708 : vector<8x1xf32> to vector<8x1xf32>
    %726 = vector.broadcast %725 : vector<8x1xf32> to vector<8x8xf32>
    %727 = arith.select %718, %726, %644 : vector<8x8xi1>, vector<8x8xf32>
    %728 = vector.shape_cast %710 : vector<8x1xf32> to vector<8x1xf32>
    %729 = vector.broadcast %728 : vector<8x1xf32> to vector<8x8xf32>
    %730 = arith.select %718, %729, %647 : vector<8x8xi1>, vector<8x8xf32>
    %731 = vector.shape_cast %712 : vector<8x1xf32> to vector<8x1xf32>
    %732 = vector.broadcast %731 : vector<8x1xf32> to vector<8x8xf32>
    %733 = arith.select %718, %732, %650 : vector<8x8xi1>, vector<8x8xf32>
    %734 = vector.shape_cast %714 : vector<8x1xf32> to vector<8x1xf32>
    %735 = vector.broadcast %734 : vector<8x1xf32> to vector<8x8xf32>
    %736 = arith.select %718, %735, %653 : vector<8x8xi1>, vector<8x8xf32>
    %737 = arith.subf %712, %708 : vector<8x1xf32>
    %738 = arith.subf %714, %710 : vector<8x1xf32>
    %739 = arith.mulf %737, %738 : vector<8x1xf32>
    %740 = vector.broadcast %712 : vector<8x1xf32> to vector<8x64xf32>
    %741 = arith.minimumf %740, %84 : vector<8x64xf32>
    %742 = vector.broadcast %708 : vector<8x1xf32> to vector<8x64xf32>
    %743 = arith.maximumf %742, %81 : vector<8x64xf32>
    %744 = arith.subf %741, %743 : vector<8x64xf32>
    %cst_132 = arith.constant 0.000000e+00 : f32
    %cst_133 = arith.constant 1.000000e+00 : f32
    %745 = vector.broadcast %cst_132 : f32 to vector<8x64xf32>
    %746 = arith.maximumf %745, %744 : vector<8x64xf32>
    %747 = vector.broadcast %cst_133 : f32 to vector<8x64xf32>
    %748 = arith.minimumf %747, %746 : vector<8x64xf32>
    %749 = vector.broadcast %714 : vector<8x1xf32> to vector<8x64xf32>
    %750 = arith.minimumf %749, %90 : vector<8x64xf32>
    %751 = vector.broadcast %710 : vector<8x1xf32> to vector<8x64xf32>
    %752 = arith.maximumf %751, %87 : vector<8x64xf32>
    %753 = arith.subf %750, %752 : vector<8x64xf32>
    %cst_134 = arith.constant 0.000000e+00 : f32
    %cst_135 = arith.constant 1.000000e+00 : f32
    %754 = vector.broadcast %cst_134 : f32 to vector<8x64xf32>
    %755 = arith.maximumf %754, %753 : vector<8x64xf32>
    %756 = vector.broadcast %cst_135 : f32 to vector<8x64xf32>
    %757 = arith.minimumf %756, %755 : vector<8x64xf32>
    %758 = arith.mulf %748, %757 : vector<8x64xf32>
    %759 = vector.broadcast %cst_48 : f32 to vector<8x64xf32>
    %760 = arith.mulf %758, %759 : vector<8x64xf32>
    %761 = vector.broadcast %cst_49 : f32 to vector<8x1xf32>
    %762 = arith.mulf %761, %739 : vector<8x1xf32>
    %763 = vector.broadcast %762 : vector<8x1xf32> to vector<8x64xf32>
    %764 = arith.addf %763, %95 : vector<8x64xf32>
    %765 = arith.cmpf oge, %760, %764 : vector<8x64xf32>
    %766 = arith.ori %765, %697 : vector<8x64xi1>
    %cst_136 = arith.constant 0xFF800000 : f32
    %767 = vector.broadcast %cst_136 : f32 to vector<8x64xf32>
    %768 = arith.select %766, %767, %685 : vector<8x64xi1>, vector<8x64xf32>
    %c8_i32 = arith.constant 8 : i32
    %c0_137 = arith.constant 0 : index
    %c0_138 = arith.constant 0 : index
    %c0_139 = arith.constant 0 : index
    %769 = vector.load %arg3[%c0_137, %c0_138, %c0_139] : memref<6x8x8xf32, #tpu.memory_space<vmem>>, vector<1x8x8xf32>
    %770 = vector.shape_cast %769 : vector<1x8x8xf32> to vector<8x8xf32>
    %771 = vector.shape_cast %721 : vector<8x8xf32> to vector<1x8x8xf32>
    tpu.vector_store %arg3[%c0_137, %c0_138, %c0_139], %771 {strides = array<i32>} : memref<6x8x8xf32, #tpu.memory_space<vmem>>, vector<1x8x8xf32>,
    %c1_140 = arith.constant 1 : index
    %c0_141 = arith.constant 0 : index
    %c0_142 = arith.constant 0 : index
    %772 = vector.load %arg3[%c1_140, %c0_141, %c0_142] : memref<6x8x8xf32, #tpu.memory_space<vmem>>, vector<1x8x8xf32>
    %773 = vector.shape_cast %772 : vector<1x8x8xf32> to vector<8x8xf32>
    %774 = vector.shape_cast %724 : vector<8x8xf32> to vector<1x8x8xf32>
    tpu.vector_store %arg3[%c1_140, %c0_141, %c0_142], %774 {strides = array<i32>} : memref<6x8x8xf32, #tpu.memory_space<vmem>>, vector<1x8x8xf32>,
    %c2_143 = arith.constant 2 : index
    %c0_144 = arith.constant 0 : index
    %c0_145 = arith.constant 0 : index
    %775 = vector.load %arg3[%c2_143, %c0_144, %c0_145] : memref<6x8x8xf32, #tpu.memory_space<vmem>>, vector<1x8x8xf32>
    %776 = vector.shape_cast %775 : vector<1x8x8xf32> to vector<8x8xf32>
    %777 = vector.shape_cast %727 : vector<8x8xf32> to vector<1x8x8xf32>
    tpu.vector_store %arg3[%c2_143, %c0_144, %c0_145], %777 {strides = array<i32>} : memref<6x8x8xf32, #tpu.memory_space<vmem>>, vector<1x8x8xf32>,
    %c3_146 = arith.constant 3 : index
    %c0_147 = arith.constant 0 : index
    %c0_148 = arith.constant 0 : index
    %778 = vector.load %arg3[%c3_146, %c0_147, %c0_148] : memref<6x8x8xf32, #tpu.memory_space<vmem>>, vector<1x8x8xf32>
    %779 = vector.shape_cast %778 : vector<1x8x8xf32> to vector<8x8xf32>
    %780 = vector.shape_cast %730 : vector<8x8xf32> to vector<1x8x8xf32>
    tpu.vector_store %arg3[%c3_146, %c0_147, %c0_148], %780 {strides = array<i32>} : memref<6x8x8xf32, #tpu.memory_space<vmem>>, vector<1x8x8xf32>,
    %c4_149 = arith.constant 4 : index
    %c0_150 = arith.constant 0 : index
    %c0_151 = arith.constant 0 : index
    %781 = vector.load %arg3[%c4_149, %c0_150, %c0_151] : memref<6x8x8xf32, #tpu.memory_space<vmem>>, vector<1x8x8xf32>
    %782 = vector.shape_cast %781 : vector<1x8x8xf32> to vector<8x8xf32>
    %783 = vector.shape_cast %733 : vector<8x8xf32> to vector<1x8x8xf32>
    tpu.vector_store %arg3[%c4_149, %c0_150, %c0_151], %783 {strides = array<i32>} : memref<6x8x8xf32, #tpu.memory_space<vmem>>, vector<1x8x8xf32>,
    %c5_152 = arith.constant 5 : index
    %c0_153 = arith.constant 0 : index
    %c0_154 = arith.constant 0 : index
    %784 = vector.load %arg3[%c5_152, %c0_153, %c0_154] : memref<6x8x8xf32, #tpu.memory_space<vmem>>, vector<1x8x8xf32>
    %785 = vector.shape_cast %784 : vector<1x8x8xf32> to vector<8x8xf32>
    %786 = vector.shape_cast %736 : vector<8x8xf32> to vector<1x8x8xf32>
    tpu.vector_store %arg3[%c5_152, %c0_153, %c0_154], %786 {strides = array<i32>} : memref<6x8x8xf32, #tpu.memory_space<vmem>>, vector<1x8x8xf32>,
    return
  }
  func.func @transform_0(%arg0: i32) -> (i32, i32, i32) {
    %c0_i32 = arith.constant 0 : i32
    %c0_i32_0 = arith.constant 0 : i32
    %c0_i32_1 = arith.constant 0 : i32
    return %c0_i32, %arg0, %c0_i32_0 : i32, i32, i32
  }
  func.func @transform_1(%arg0: i32) -> (i32, i32) {
    %c0_i32 = arith.constant 0 : i32
    %c0_i32_0 = arith.constant 0 : i32
    %c0_i32_1 = arith.constant 0 : i32
    return %c0_i32, %c0_i32_0 : i32, i32
  }
  func.func @transform_2(%arg0: i32) -> (i32, i32, i32) {
    %c0_i32 = arith.constant 0 : i32
    %c0_i32_0 = arith.constant 0 : i32
    %c0_i32_1 = arith.constant 0 : i32
    return %c0_i32, %arg0, %c0_i32_0 : i32, i32, i32
  }
}

</mosaic_0001>

<bundles_post_ra>
// kernel: tpu_custom_call.1
= control target key start
LH: loop header
LB: loop body
LE: loop exit
PB: predicated region body
PF: predicated region fallthrough
CT: control target
= control target key end

     0   :  { %7 = vsyncpa [#allocation3], 0  ;;  %s1515_s0 = inlined_call_operand.hbm [shape: f32[13,8,64], index: 0, kind: input, shape index: {}]   ;;  %s1516_s1 = inlined_call_operand.hbm [shape: f32[4,64], index: 1, kind: input, shape index: {}]   ;;  %s1517_s2 = inlined_call_operand.hbm [shape: f32[6,8,8], index: 2, kind: output, shape index: {}]  }
   0x1   :  { %8 = vsyncpa [#allocation6], 0 }
   0x2   :  { %9 = vsyncpa [#allocation4], 0  ;;  %s827_s9 = smov [#allocation2]   ;;  %s755_s13 = scalar_lea.hbm %s1515_s0, 1664 }
   0x3   :  { %s15_s10 = sshll.u32 %s827_s9, 4  ;;  %p756_p0 = scmp.ne.s32.totalorder %s1515_s0, %s755_s13  ;;  %s16_s10 = int_to_ptr.vmem [resolvable:$true] %s15_s10 }
   0x4   :  { %p759_p1 = scmp.lt.u32.totalorder %s755_s13, %s1515_s0 }
   0x6   :  { %p761_p2 = pnand %p759_p1, %p756_p0 }
   0x8   :  { %764 = shalt.err (!%p761_p2)
}
   0x9   :  { %s765_s18 = scalar_lea.vmem %s16_s10, 1664  ;;  %p770_p4 = scmp.lt.s32.totalorder %s16_s10, %s16_s10 }
   0xa   :  { %p766_p3 = scmp.ne.s32.totalorder %s16_s10, %s765_s18  ;;  %p771_p5 = scmp.lt.s32.totalorder %s765_s18, %s765_s18 }
   0xc   :  { %p772_p6 = por %p771_p5, %p770_p4 }
   0xe   :  { %p773_p7 = pnand %p772_p6, %p766_p3 }
  0x10   :  { %776 = shalt.err (!%p773_p7)
}
  0x11   :  { %s828_s19 = smov 128   ;;  %s829_s20 = smov 8  }
  0x12   :  { %21 = dma.hbm_to_vmem [thread:$0]  %s1515_s0, 1664, %s16_s10, [#allocation3], %s828_s19, %s828_s19, %s829_s20  }
  0x13   :  { %s830_s23 = smov [#allocation5]   ;;  %s777_s27 = scalar_lea.hbm %s1516_s1, 64 }
  0x14   :  { %s28_s24 = sshll.u32 %s830_s23, 4  ;;  %p778_p8 = scmp.ne.s32.totalorder %s1516_s1, %s777_s27  ;;  %s29_s24 = int_to_ptr.vmem [resolvable:$true] %s28_s24 }
  0x15   :  { %p781_p9 = scmp.lt.u32.totalorder %s777_s27, %s1516_s1 }
  0x17   :  { %p783_p10 = pnand %p781_p9, %p778_p8 }
  0x19   :  { %786 = shalt.err (!%p783_p10)
}
  0x1a   :  { %s787_s4 = scalar_lea.vmem %s29_s24, 64  ;;  %p792_p12 = scmp.lt.s32.totalorder %s29_s24, %s29_s24 }
  0x1b   :  { %p788_p11 = scmp.ne.s32.totalorder %s29_s24, %s787_s4  ;;  %p793_p13 = scmp.lt.s32.totalorder %s787_s4, %s787_s4 }
  0x1d   :  { %p794_p0 = por %p793_p13, %p792_p12 }
  0x1f   :  { %p795_p1 = pnand %p794_p0, %p788_p11 }
  0x21   :  { %798 = shalt.err (!%p795_p1)
}
  0x22   :  { %31 = dma.hbm_to_vmem [thread:$0]  %s1516_s1, 64, %s29_s24, [#allocation6]  }
  0x23   :  { %821 = dma.done.wait [#allocation3], 1664  }
  0x24   :  { %822 = vsyncadd [#allocation3], 4294965632 }
  0x25   :  { %823 = dma.done.wait [#allocation6], 64  }
  0x26   :  { %824 = vsyncadd [#allocation6], 4294967232  ;;  %v39_v0 = vld [vmem:[#allocation2 + $0x8] sm:$0xff]  ;;  %v41_v1 = vld [vmem:[#allocation2 + $0x10] sm:$0xff]  ;;  %v831_v9 = vmov 0.0   ;;  %v832_v12 = vmov 2.0   ;;  %v88_v27 = vlaneseq }
  0x27   :  { %v43_v2 = vld [vmem:[#allocation2 + $0x18] sm:$0xff]  ;;  %v45_v3 = vld [vmem:[#allocation2 + $0x20] sm:$0xff]  ;;  %v47_v4 = vld [vmem:[#allocation2 + $0x28] sm:$0xff]  ;;  %vm54_vm0 = vcmp.gt.f32.partialorder %v41_v1, %v39_v0  ;;  %v833_v15 = vmov 4.0   ;;  %v834_v18 = vmov 6.0   ;;  %vm1521_vm6 = vcmask 523264  }
  0x28   :  { %v49_v5 = vld [vmem:[#allocation2 + $0x30] sm:$0xff]  ;;  %v51_v6 = vld [vmem:[#allocation2 + $0x38] sm:$0xff]  ;;  %v53_v7 = vld [vmem:[#allocation2 + $0x40] sm:$0xff]  ;;  %v55_v8 = vsel %vm54_vm0, %v41_v1, %v39_v0  ;;  %v56_v10 = vsel %vm54_vm0, 1.0, %v831_v9  ;;  %vm57_vm1 = vcmp.gt.f32.partialorder %v45_v3, %v43_v2  ;;  %v884_v28 = vand.u32 127, %v88_v27  ;;  %s835_s1 = smov [#allocation7]  }
  0x29   :  { %vm60_vm2 = vcmp.gt.f32.partialorder %v49_v5, %v47_v4  ;;  %v58_v11 = vsel %vm57_vm1, %v45_v3, %v43_v2  ;;  %v59_v13 = vsel %vm57_vm1, 3.0, %v832_v12  ;;  %vm63_vm3 = vcmp.gt.f32.partialorder %v53_v7, %v51_v6  ;;  %v86_v38 = vld [vmem:[#allocation2 + $0x60] sm:$0xff]  ;;  %v84_v39 = vld [vmem:[#allocation2 + $0x58] sm:$0xff]  ;;  %v78_v45 = vld [vmem:[#allocation5 + $0x3] sm:$0x1]  ;;  %s727_s6 = sshll.u32 %s835_s1, 4  ;;  %s728_s6 = int_to_ptr.vmem [resolvable:$true] %s727_s6 }
  0x2a   :  { %v61_v14 = vsel %vm60_vm2, %v49_v5, %v47_v4  ;;  %v62_v16 = vsel %vm60_vm2, 5.0, %v833_v15  ;;  %vm66_vm4 = vcmp.gt.f32.partialorder %v58_v11, %v55_v8  ;;  %v64_v17 = vsel %vm63_vm3, %v53_v7, %v51_v6  ;;  %v77_v46 = vld [vmem:[#allocation5 + $0x2] sm:$0x1]  ;;  %v82_v56 = vld [vmem:[#allocation2 + $0x50] sm:$0xff]  ;;  %v741_v62 = vld [vmem:[#allocation5 + $0x1] ss:$0 sm:$0xff]  ;;  %p804_p3 = scmp.lt.s32.totalorder %s728_s6, %s728_s6 }
  0x2b   :  { %v65_v19 = vsel %vm63_vm3, 7.0, %v834_v18  ;;  %v67_v20 = vsel %vm66_vm4, %v58_v11, %v55_v8  ;;  %v68_v21 = vsel %vm66_vm4, %v59_v13, %v56_v10  ;;  %vm69_vm5 = vcmp.gt.f32.partialorder %v64_v17, %v61_v14  ;;  %v80_v57 = vld [vmem:[#allocation2 + $0x48] sm:$0xff]  ;;  %s799_s7 = scalar_lea.vmem %s728_s6, 768 }
  0x2c   :  { %v70_v22 = vsel %vm69_vm5, %v64_v17, %v61_v14  ;;  %v71_v23 = vsel %vm69_vm5, %v65_v19, %v62_v16  ;;  %v117_v40 = vmul.f32 0.2, %v86_v38  ;;  %v109_v41 = vmul.f32 0.2, %v84_v39  ;;  %v740_v63 = vld [vmem:[#allocation5] ss:$0 sm:$0xff]  ;;  %p800_p2 = scmp.ne.s32.totalorder %s728_s6, %s799_s7  ;;  %p805_p4 = scmp.lt.s32.totalorder %s799_s7, %s799_s7 }
  0x2d   :  { %vm72_vm7 = vcmp.gt.f32.partialorder %v70_v22, %v67_v20  ;;  %v89_v44 = vshrl.u32 %v88_v27, 7  ;;  %v98_v48 = vmul.f32 0.1, %v78_v45  ;;  %v87_v49 = vmul.f32 0.1, %v77_v46 }
  0x2e   :  { %v878_v24 = vsel %vm72_vm7, %v70_v22, %v67_v20  ;;  %v880_v25 = vsel %vm72_vm7, %v71_v23, %v68_v21  ;;  %v118_v42 = vmul.f32 1.442695, %v117_v40  ;;  %v110_v43 = vmul.f32 1.442695, %v109_v41  ;;  %p806_p5 = por %p805_p4, %p804_p3 }
  0x2f   :  { %v138_v26 = vsel %vm1521_vm6, %v878_v24, -inf  ;;  %v90_v47 = vsub.s32 0, %v89_v44  ;;  %vm182_vm0 = vcmp.eq.s32.totalorder %v884_v28, 0  ;;  %vm256_vm2 = vcmp.eq.s32.totalorder %v884_v28, 1 }
  0x30   :  { %139 = vmax.xlane.f32.xlu0 %v138_v26  ;;  %751 = vpow2.f32 %v118_v42  ;;  %p807_p6 = pnand %p806_p5, %p800_p2 }
  0x31   :  { %753 = vpow2.f32 %v110_v43  ;;  %v102_v51 = vrot.slane %v98_v48, %v90_v47  ;;  %v123_v52 = vrot.slane %v78_v45, %v90_v47  ;;  %v91_v53 = vrot.slane %v87_v49, %v90_v47 }
  0x32   :  { %v115_v54 = vrot.slane %v77_v46, %v90_v47 }
  0x33   :  { %v103_v58 = vmul.f32 %v102_v51, %v82_v56  ;;  %v92_v60 = vmul.f32 %v91_v53, %v80_v57 }
  0x35   :  { %v108_v1 = vadd.f32 %v741_v62, %v103_v58  ;;  %v97_v3 = vadd.f32 %v740_v63, %v92_v60 }
  0x3a   :  { %v752_v50 = vpop.eup %751 }
  0x3b   :  { %v754_v55 = vpop.eup %753  ;;  %v124_v59 = vmul.f32 %v752_v50, %v123_v52 }
  0x3c   :  { %v116_v61 = vmul.f32 %v754_v55, %v115_v54 }
  0x3d   :  { %v128_v2 = vmul.f32 0.5, %v124_v59 }
  0x3e   :  { %v125_v4 = vmul.f32 0.5, %v116_v61 }
  0x3f   :  { %v892_v8 = vsub.f32 %v108_v1, %v128_v2  ;;  %v896_v11 = vadd.f32 %v128_v2, %v108_v1 }
  0x40   :  { %v894_v9 = vsub.f32 %v97_v3, %v125_v4  ;;  %v898_v12 = vadd.f32 %v125_v4, %v97_v3 }
  0xbd   :  { %v886_v29 = vpop.xlane.xlu0 %139 }
  0xbe   :  { %vm142_vm8 = vcmp.eq.f32.partialorder %v878_v24, %v886_v29  ;;  %vm141_vm1 = vcmp.ge.f32.partialorder %v886_v29, 0.01 }
  0xbf   :  { %v143_v30 = vsel %vm142_vm8, %v884_v28, 64  ;;  %vm986_vm4 = vmand %vm182_vm0, %vm141_vm1 }
  0xc0   :  { %v144_v31 = vsel %vm1521_vm6, %v143_v30, 2147483647  ;;  %v131_v30 = vsub.f32 %v898_v12, %v894_v9 }
  0xc1   :  { %v146_v32 = vshra.s32 %v144_v31, 16  ;;  %v145_v34 = vand.u32 65535, %v144_v31  ;;  %v132_v31 = vsub.f32 %v896_v11, %v892_v8 }
  0xc3   :  { %v148_v33 = vcvt.s32.f32 %v146_v32  ;;  %v147_v36 = vcvt.s32.f32 %v145_v34  ;;  %v133_v41 = vmul.f32 %v132_v31, %v131_v30 }
  0xc5   :  { %149 = vmin.xlane.f32.xlu0 %v148_v33  ;;  %v945_v47 = vmul.f32 0.5, %v133_v41 }
 0x152   :  { %v150_v35 = vpop.xlane.xlu0 %149 }
 0x153   :  { %vm151_vm9 = vcmp.eq.f32.partialorder %v148_v33, %v150_v35  ;;  %v156_v0 = vcvt.f32.s32 %v150_v35 }
 0x154   :  { %v152_v37 = vsel %vm151_vm9, %v147_v36, inf }
 0x155   :  { %153 = vmin.xlane.f32.xlu1 %v152_v37  ;;  %v157_v6 = vshll.u32 %v156_v0, 16 }
 0x1e2   :  { %v154_v5 = vpop.xlane.xlu1 %153 }
 0x1e3   :  { %v155_v7 = vcvt.f32.s32 %v154_v5 }
 0x1e5   :  { %v158_v10 = vadd.s32 %v157_v6, %v155_v7 }
 0x1e7   :  { %vm901_vm10 = vcmp.eq.s32.totalorder %v884_v28, %v158_v10 }
 0x1e8   :  { %v164_v14 = vsel %vm901_vm10, %v892_v8, 0.0  ;;  %v163_v15 = vsel %vm901_vm10, %v894_v9, 0.0  ;;  %v166_v18 = vsel %vm901_vm10, %v896_v11, 0.0  ;;  %v165_v19 = vsel %vm901_vm10, %v898_v12, 0.0 }
 0x1e9   :  { %v173_v16 = vsel %vm1521_vm6, %v164_v14, 0.0  ;;  %v170_v17 = vsel %vm1521_vm6, %v163_v15, 0.0  ;;  %v179_v20 = vsel %vm1521_vm6, %v166_v18, 0.0  ;;  %v176_v21 = vsel %vm1521_vm6, %v165_v19, 0.0 }
 0x1ea   :  { %174 = vadd.xlane.f32.xlu0 %v173_v16  ;;  %171 = vadd.xlane.f32.xlu1 %v170_v17  ;;  %v1534_v19 = vmov 0 }
 0x1ee   :  { %180 = vadd.xlane.f32.xlu0 %v179_v20  ;;  %177 = vadd.xlane.f32.xlu1 %v176_v21 }
 0x277   :  { %v921_v22 = vpop.xlane.xlu0 %174  ;;  %v923_v23 = vpop.xlane.xlu1 %171 }
 0x278   :  { %v201_v32 = vmax.f32 %v921_v22, %v892_v8  ;;  %v196_v35 = vmax.f32 %v923_v23, %v894_v9  ;;  %v189_v17 = vsel %vm986_vm4, %v921_v22, 0.0  ;;  %v188_v18 = vsel %vm986_vm4, %v923_v23, 0.0 }
 0x27b   :  { %v925_v26 = vpop.xlane.xlu0 %180  ;;  %v927_v27 = vpop.xlane.xlu1 %177 }
 0x27c   :  { %v193_v33 = vsub.f32 %v925_v26, %v921_v22  ;;  %v200_v34 = vmin.f32 %v925_v26, %v896_v11  ;;  %v192_v36 = vsub.f32 %v927_v27, %v923_v23  ;;  %v195_v37 = vmin.f32 %v927_v27, %v898_v12 }
 0x27e   :  { %v202_v38 = vsub.f32 %v200_v34, %v201_v32  ;;  %v194_v39 = vmul.f32 %v193_v33, %v192_v36  ;;  %v197_v40 = vsub.f32 %v195_v37, %v196_v35 }
 0x280   :  { %v203_v42 = vmax.f32 %v202_v38, 0.0  ;;  %v198_v43 = vmax.f32 %v197_v40, 0.0  ;;  %v207_v46 = vmul.f32 0.5, %v194_v39 }
 0x282   :  { %v204_v44 = vmin.f32 %v203_v42, 1.0  ;;  %v199_v45 = vmin.f32 %v198_v43, 1.0  ;;  %v208_v50 = vadd.f32 %v207_v46, %v945_v47 }
 0x284   :  { %v205_v48 = vmul.f32 %v204_v44, %v199_v45 }
 0x286   :  { %v206_v49 = vmul.f32 1.5, %v205_v48 }
 0x288   :  { %vm209_vm11 = vcmp.ge.f32.partialorder %v206_v49, %v208_v50 }
 0x289   :  { %vm210_vm12 = vmor %vm209_vm11, %vm901_vm10 }
 0x28a   :  { %v951_v51 = vsel %vm210_vm12, -inf, %v878_v24 }
 0x28b   :  { %v212_v52 = vsel %vm1521_vm6, %v951_v51, -inf }
 0x28c   :  { %213 = vmax.xlane.f32.xlu1 %v212_v52 }
 0x319   :  { %v955_v53 = vpop.xlane.xlu1 %213 }
 0x31a   :  { %vm216_vm13 = vcmp.eq.f32.partialorder %v951_v51, %v955_v53  ;;  %vm215_vm3 = vcmp.ge.f32.partialorder %v955_v53, 0.01 }
 0x31b   :  { %v217_v54 = vsel %vm216_vm13, %v884_v28, 64  ;;  %vm996_vm5 = vmand %vm256_vm2, %vm215_vm3  ;;  %vm330_vm13 = vcmp.eq.s32.totalorder %v884_v28, 2 }
 0x31c   :  { %v218_v55 = vsel %vm1521_vm6, %v217_v54, 2147483647  ;;  %v1535_v19 = vsel %vm996_vm5, 4294967295, %v1534_v19 }
 0x31d   :  { %v220_v56 = vshra.s32 %v218_v55, 16  ;;  %v219_v58 = vand.u32 65535, %v218_v55 }
 0x31f   :  { %v222_v57 = vcvt.s32.f32 %v220_v56  ;;  %v221_v24 = vcvt.s32.f32 %v219_v58 }
 0x321   :  { %223 = vmin.xlane.f32.xlu0 %v222_v57 }
 0x3ae   :  { %v224_v59 = vpop.xlane.xlu0 %223 }
 0x3af   :  { %vm225_vm14 = vcmp.eq.f32.partialorder %v222_v57, %v224_v59  ;;  %v230_v61 = vcvt.f32.s32 %v224_v59 }
 0x3b0   :  { %v226_v60 = vsel %vm225_vm14, %v221_v24, inf }
 0x3b1   :  { %227 = vmin.xlane.f32.xlu1 %v226_v60  ;;  %v231_v63 = vshll.u32 %v230_v61, 16 }
 0x43e   :  { %v228_v62 = vpop.xlane.xlu1 %227 }
 0x43f   :  { %v229_v0 = vcvt.f32.s32 %v228_v62 }
 0x441   :  { %v232_v1 = vadd.s32 %v231_v63, %v229_v0 }
 0x443   :  { %vm962_vm15 = vcmp.eq.s32.totalorder %v884_v28, %v232_v1 }
 0x444   :  { %v238_v3 = vsel %vm962_vm15, %v892_v8, 0.0  ;;  %v237_v4 = vsel %vm962_vm15, %v894_v9, 0.0  ;;  %v240_v7 = vsel %vm962_vm15, %v896_v11, 0.0  ;;  %v239_v10 = vsel %vm962_vm15, %v898_v12, 0.0 }
 0x445   :  { %v247_v5 = vsel %vm1521_vm6, %v238_v3, 0.0  ;;  %v244_v6 = vsel %vm1521_vm6, %v237_v4, 0.0  ;;  %v253_v14 = vsel %vm1521_vm6, %v240_v7, 0.0  ;;  %v250_v15 = vsel %vm1521_vm6, %v239_v10, 0.0 }
 0x446   :  { %248 = vadd.xlane.f32.xlu1 %v247_v5  ;;  %245 = vadd.xlane.f32.xlu0 %v244_v6 }
 0x44a   :  { %254 = vadd.xlane.f32.xlu1 %v253_v14  ;;  %251 = vadd.xlane.f32.xlu0 %v250_v15 }
 0x4d3   :  { %v249_v20 = vpop.xlane.xlu1 %248  ;;  %v246_v21 = vpop.xlane.xlu0 %245 }
 0x4d4   :  { %v1002_v30 = vsel %vm996_vm5, %v249_v20, %v189_v17  ;;  %v1006_v31 = vsel %vm996_vm5, %v246_v21, %v188_v18  ;;  %v275_v23 = vmax.f32 %v249_v20, %v892_v8  ;;  %v270_v35 = vmax.f32 %v246_v21, %v894_v9 }
 0x4d5   :  { %v1538_v18 = vmov 0 }
 0x4d7   :  { %v1008_v32 = vpop.xlane.xlu1 %254  ;;  %v1010_v22 = vpop.xlane.xlu0 %251 }
 0x4d8   :  { %v267_v33 = vsub.f32 %v1008_v32, %v249_v20  ;;  %v274_v34 = vmin.f32 %v1008_v32, %v896_v11  ;;  %v266_v36 = vsub.f32 %v1010_v22, %v246_v21  ;;  %v269_v37 = vmin.f32 %v1010_v22, %v898_v12 }
 0x4da   :  { %v276_v38 = vsub.f32 %v274_v34, %v275_v23  ;;  %v268_v39 = vmul.f32 %v267_v33, %v266_v36  ;;  %v271_v40 = vsub.f32 %v269_v37, %v270_v35 }
 0x4dc   :  { %v277_v41 = vmax.f32 %v276_v38, 0.0  ;;  %v272_v42 = vmax.f32 %v271_v40, 0.0  ;;  %v281_v45 = vmul.f32 0.5, %v268_v39 }
 0x4de   :  { %v278_v43 = vmin.f32 %v277_v41, 1.0  ;;  %v273_v44 = vmin.f32 %v272_v42, 1.0  ;;  %v282_v49 = vadd.f32 %v281_v45, %v945_v47 }
 0x4e0   :  { %v279_v46 = vmul.f32 %v278_v43, %v273_v44 }
 0x4e2   :  { %v280_v48 = vmul.f32 1.5, %v279_v46 }
 0x4e4   :  { %vm283_vm7 = vcmp.ge.f32.partialorder %v280_v48, %v282_v49 }
 0x4e5   :  { %vm284_vm8 = vmor %vm283_vm7, %vm962_vm15 }
 0x4e6   :  { %v285_v50 = vsel %vm284_vm8, -inf, %v951_v51 }
 0x4e7   :  { %v286_v52 = vsel %vm1521_vm6, %v285_v50, -inf }
 0x4e8   :  { %287 = vmax.xlane.f32.xlu0 %v286_v52 }
 0x575   :  { %v1025_v54 = vpop.xlane.xlu0 %287 }
 0x576   :  { %vm290_vm9 = vcmp.eq.f32.partialorder %v285_v50, %v1025_v54  ;;  %vm289_vm14 = vcmp.ge.f32.partialorder %v1025_v54, 0.01 }
 0x577   :  { %v291_v55 = vsel %vm290_vm9, %v884_v28, 64  ;;  %vm1053_vm0 = vmand %vm330_vm13, %vm289_vm14  ;;  %vm404_vm9 = vcmp.eq.s32.totalorder %v884_v28, 3 }
 0x578   :  { %v292_v56 = vsel %vm1521_vm6, %v291_v55, 2147483647  ;;  %v1539_v18 = vsel %vm1053_vm0, 4294967295, %v1538_v18 }
 0x579   :  { %v294_v57 = vshra.s32 %v292_v56, 16  ;;  %v293_v59 = vand.u32 65535, %v292_v56 }
 0x57b   :  { %v296_v58 = vcvt.s32.f32 %v294_v57  ;;  %v295_v60 = vcvt.s32.f32 %v293_v59 }
 0x57d   :  { %297 = vmin.xlane.f32.xlu1 %v296_v58 }
 0x60a   :  { %v298_v24 = vpop.xlane.xlu1 %297 }
 0x60b   :  { %vm299_vm11 = vcmp.eq.f32.partialorder %v296_v58, %v298_v24  ;;  %v304_v51 = vcvt.f32.s32 %v298_v24 }
 0x60c   :  { %v300_v61 = vsel %vm299_vm11, %v295_v60, inf }
 0x60d   :  { %301 = vmin.xlane.f32.xlu0 %v300_v61  ;;  %v305_v63 = vshll.u32 %v304_v51, 16 }
 0x69a   :  { %v302_v62 = vpop.xlane.xlu0 %301 }
 0x69b   :  { %v303_v0 = vcvt.f32.s32 %v302_v62 }
 0x69d   :  { %v306_v1 = vadd.s32 %v305_v63, %v303_v0 }
 0x69f   :  { %vm1031_vm12 = vcmp.eq.s32.totalorder %v884_v28, %v306_v1 }
 0x6a0   :  { %v312_v4 = vsel %vm1031_vm12, %v892_v8, 0.0  ;;  %v311_v5 = vsel %vm1031_vm12, %v894_v9, 0.0  ;;  %v314_v10 = vsel %vm1031_vm12, %v896_v11, 0.0  ;;  %v313_v14 = vsel %vm1031_vm12, %v898_v12, 0.0 }
 0x6a1   :  { %v321_v6 = vsel %vm1521_vm6, %v312_v4, 0.0  ;;  %v318_v7 = vsel %vm1521_vm6, %v311_v5, 0.0  ;;  %v327_v15 = vsel %vm1521_vm6, %v314_v10, 0.0  ;;  %v324_v17 = vsel %vm1521_vm6, %v313_v14, 0.0 }
 0x6a2   :  { %322 = vadd.xlane.f32.xlu0 %v321_v6  ;;  %319 = vadd.xlane.f32.xlu1 %v318_v7  ;;  %v1540_v14 = vmov 0 }
 0x6a6   :  { %328 = vadd.xlane.f32.xlu0 %v327_v15  ;;  %325 = vadd.xlane.f32.xlu1 %v324_v17 }
 0x72f   :  { %v1057_v20 = vpop.xlane.xlu0 %322  ;;  %v1059_v21 = vpop.xlane.xlu1 %319 }
 0x730   :  { %v337_v23 = vsel %vm1053_vm0, %v1057_v20, %v1002_v30  ;;  %v336_v33 = vsel %vm1053_vm0, %v1059_v21, %v1006_v31  ;;  %v349_v36 = vmax.f32 %v1057_v20, %v892_v8  ;;  %v344_v39 = vmax.f32 %v1059_v21, %v894_v9 }
 0x733   :  { %v1069_v34 = vpop.xlane.xlu0 %328  ;;  %v1071_v35 = vpop.xlane.xlu1 %325 }
 0x734   :  { %v341_v37 = vsub.f32 %v1069_v34, %v1057_v20  ;;  %v348_v38 = vmin.f32 %v1069_v34, %v896_v11  ;;  %v340_v40 = vsub.f32 %v1071_v35, %v1059_v21  ;;  %v343_v41 = vmin.f32 %v1071_v35, %v898_v12 }
 0x736   :  { %v350_v42 = vsub.f32 %v348_v38, %v349_v36  ;;  %v342_v43 = vmul.f32 %v341_v37, %v340_v40  ;;  %v345_v44 = vsub.f32 %v343_v41, %v344_v39 }
 0x738   :  { %v351_v45 = vmax.f32 %v350_v42, 0.0  ;;  %v346_v46 = vmax.f32 %v345_v44, 0.0  ;;  %v355_v52 = vmul.f32 0.5, %v342_v43 }
 0x73a   :  { %v352_v48 = vmin.f32 %v351_v45, 1.0  ;;  %v347_v49 = vmin.f32 %v346_v46, 1.0  ;;  %v356_v57 = vadd.f32 %v355_v52, %v945_v47 }
 0x73c   :  { %v353_v55 = vmul.f32 %v352_v48, %v347_v49 }
 0x73e   :  { %v354_v56 = vmul.f32 1.5, %v353_v55 }
 0x740   :  { %vm357_vm1 = vcmp.ge.f32.partialorder %v354_v56, %v356_v57 }
 0x741   :  { %vm358_vm2 = vmor %vm357_vm1, %vm1031_vm12 }
 0x742   :  { %v359_v58 = vsel %vm358_vm2, -inf, %v285_v50 }
 0x743   :  { %v360_v59 = vsel %vm1521_vm6, %v359_v58, -inf }
 0x744   :  { %361 = vmax.xlane.f32.xlu1 %v360_v59 }
 0x7d1   :  { %v1089_v24 = vpop.xlane.xlu1 %361 }
 0x7d2   :  { %vm364_vm3 = vcmp.eq.f32.partialorder %v359_v58, %v1089_v24  ;;  %vm363_vm11 = vcmp.ge.f32.partialorder %v1089_v24, 0.01 }
 0x7d3   :  { %v365_v60 = vsel %vm364_vm3, %v884_v28, 64  ;;  %vm1117_vm13 = vmand %vm404_vm9, %vm363_vm11  ;;  %vm478_vm9 = vcmp.eq.s32.totalorder %v884_v28, 4 }
 0x7d4   :  { %v366_v61 = vsel %vm1521_vm6, %v365_v60, 2147483647 }
 0x7d5   :  { %v368_v51 = vshra.s32 %v366_v61, 16  ;;  %v367_v63 = vand.u32 65535, %v366_v61 }
 0x7d7   :  { %v370_v62 = vcvt.s32.f32 %v368_v51  ;;  %v369_v1 = vcvt.s32.f32 %v367_v63 }
 0x7d9   :  { %371 = vmin.xlane.f32.xlu0 %v370_v62 }
 0x866   :  { %v372_v0 = vpop.xlane.xlu0 %371 }
 0x867   :  { %vm373_vm7 = vcmp.eq.f32.partialorder %v370_v62, %v372_v0  ;;  %v378_v50 = vcvt.f32.s32 %v372_v0 }
 0x868   :  { %v374_v4 = vsel %vm373_vm7, %v369_v1, inf }
 0x869   :  { %375 = vmin.xlane.f32.xlu1 %v374_v4  ;;  %v379_v6 = vshll.u32 %v378_v50, 16 }
 0x8f6   :  { %v376_v5 = vpop.xlane.xlu1 %375 }
 0x8f7   :  { %v377_v7 = vcvt.f32.s32 %v376_v5 }
 0x8f9   :  { %v380_v10 = vadd.s32 %v379_v6, %v377_v7 }
 0x8fb   :  { %vm1095_vm8 = vcmp.eq.s32.totalorder %v884_v28, %v380_v10 }
 0x8fc   :  { %v1541_v14 = vsel %vm1095_vm8, 4294967295, %v1540_v14  ;;  %v386_v15 = vsel %vm1095_vm8, %v892_v8, 0.0  ;;  %v385_v17 = vsel %vm1095_vm8, %v894_v9, 0.0  ;;  %v388_v38 = vsel %vm1095_vm8, %v896_v11, 0.0 }
 0x8fd   :  { %v395_v36 = vsel %vm1521_vm6, %v386_v15, 0.0  ;;  %v392_v37 = vsel %vm1521_vm6, %v385_v17, 0.0  ;;  %v387_v39 = vsel %vm1095_vm8, %v898_v12, 0.0  ;;  %v401_v40 = vsel %vm1521_vm6, %v388_v38, 0.0 }
 0x8fe   :  { %396 = vadd.xlane.f32.xlu1 %v395_v36  ;;  %393 = vadd.xlane.f32.xlu0 %v392_v37  ;;  %v398_v41 = vsel %vm1521_vm6, %v387_v39, 0.0 }
 0x902   :  { %402 = vadd.xlane.f32.xlu1 %v401_v40  ;;  %399 = vadd.xlane.f32.xlu0 %v398_v41 }
 0x98b   :  { %v397_v43 = vpop.xlane.xlu1 %396  ;;  %v394_v44 = vpop.xlane.xlu0 %393 }
 0x98c   :  { %v1128_v45 = vsel %vm1117_vm13, %v397_v43, %v337_v23  ;;  %v1137_v46 = vsel %vm1117_vm13, %v394_v44, %v336_v33  ;;  %v423_v52 = vmax.f32 %v397_v43, %v892_v8  ;;  %v418_v23 = vmax.f32 %v394_v44, %v894_v9 }
 0x98f   :  { %v1139_v48 = vpop.xlane.xlu1 %402  ;;  %v1141_v49 = vpop.xlane.xlu0 %399 }
 0x990   :  { %v415_v30 = vsub.f32 %v1139_v48, %v397_v43  ;;  %v422_v20 = vmin.f32 %v1139_v48, %v896_v11  ;;  %v414_v55 = vsub.f32 %v1141_v49, %v394_v44  ;;  %v417_v31 = vmin.f32 %v1141_v49, %v898_v12 }
 0x991   :  { %v236_v43 = vsel %vm962_vm15, %v880_v25, 0.0 }
 0x992   :  { %v424_v21 = vsub.f32 %v422_v20, %v423_v52  ;;  %v416_v33 = vmul.f32 %v415_v30, %v414_v55  ;;  %v419_v56 = vsub.f32 %v417_v31, %v418_v23 }
 0x994   :  { %v425_v57 = vmax.f32 %v424_v21, 0.0  ;;  %v420_v59 = vmax.f32 %v419_v56, 0.0  ;;  %v429_v51 = vmul.f32 0.5, %v416_v33  ;;  %v1546_v33 = vmov 0 }
 0x996   :  { %v426_v60 = vmin.f32 %v425_v57, 1.0  ;;  %v421_v61 = vmin.f32 %v420_v59, 1.0  ;;  %v430_v0 = vadd.f32 %v429_v51, %v945_v47 }
 0x998   :  { %v427_v62 = vmul.f32 %v426_v60, %v421_v61 }
 0x99a   :  { %v428_v63 = vmul.f32 1.5, %v427_v62 }
 0x99c   :  { %vm431_vm14 = vcmp.ge.f32.partialorder %v428_v63, %v430_v0 }
 0x99d   :  { %vm432_vm1 = vmor %vm431_vm14, %vm1095_vm8 }
 0x99e   :  { %v433_v1 = vsel %vm432_vm1, -inf, %v359_v58 }
 0x99f   :  { %v434_v4 = vsel %vm1521_vm6, %v433_v1, -inf }
 0x9a0   :  { %435 = vmax.xlane.f32.xlu0 %v434_v4 }
 0xa2d   :  { %v1155_v50 = vpop.xlane.xlu0 %435 }
 0xa2e   :  { %vm438_vm2 = vcmp.eq.f32.partialorder %v433_v1, %v1155_v50  ;;  %vm437_vm11 = vcmp.ge.f32.partialorder %v1155_v50, 0.01 }
 0xa2f   :  { %v439_v5 = vsel %vm438_vm2, %v884_v28, 64  ;;  %vm1183_vm14 = vmand %vm478_vm9, %vm437_vm11 }
 0xa30   :  { %v440_v6 = vsel %vm1521_vm6, %v439_v5, 2147483647  ;;  %v1547_v33 = vsel %vm1183_vm14, 4294967295, %v1546_v33 }
 0xa31   :  { %v442_v7 = vshra.s32 %v440_v6, 16  ;;  %v441_v15 = vand.u32 65535, %v440_v6 }
 0xa33   :  { %v444_v10 = vcvt.s32.f32 %v442_v7  ;;  %v443_v36 = vcvt.s32.f32 %v441_v15 }
 0xa35   :  { %445 = vmin.xlane.f32.xlu1 %v444_v10 }
 0xac2   :  { %v446_v17 = vpop.xlane.xlu1 %445 }
 0xac3   :  { %vm447_vm3 = vcmp.eq.f32.partialorder %v444_v10, %v446_v17  ;;  %v452_v58 = vcvt.f32.s32 %v446_v17 }
 0xac4   :  { %v448_v37 = vsel %vm447_vm3, %v443_v36, inf }
 0xac5   :  { %449 = vmin.xlane.f32.xlu0 %v448_v37  ;;  %v453_v39 = vshll.u32 %v452_v58, 16 }
 0xb52   :  { %v450_v38 = vpop.xlane.xlu0 %449 }
 0xb53   :  { %v451_v40 = vcvt.f32.s32 %v450_v38 }
 0xb55   :  { %v454_v41 = vadd.s32 %v453_v39, %v451_v40 }
 0xb57   :  { %vm1161_vm7 = vcmp.eq.s32.totalorder %v884_v28, %v454_v41 }
 0xb58   :  { %v460_v44 = vsel %vm1161_vm7, %v892_v8, 0.0  ;;  %v459_v52 = vsel %vm1161_vm7, %v894_v9, 0.0  ;;  %v462_v23 = vsel %vm1161_vm7, %v896_v11, 0.0  ;;  %v461_v55 = vsel %vm1161_vm7, %v898_v12, 0.0 }
 0xb59   :  { %v469_v30 = vsel %vm1521_vm6, %v460_v44, 0.0  ;;  %v466_v20 = vsel %vm1521_vm6, %v459_v52, 0.0  ;;  %v475_v31 = vsel %vm1521_vm6, %v462_v23, 0.0  ;;  %v472_v21 = vsel %vm1521_vm6, %v461_v55, 0.0 }
 0xb5a   :  { %470 = vadd.xlane.f32.xlu0 %v469_v30  ;;  %467 = vadd.xlane.f32.xlu1 %v466_v20 }
 0xb5e   :  { %476 = vadd.xlane.f32.xlu0 %v475_v31  ;;  %473 = vadd.xlane.f32.xlu1 %v472_v21 }
 0xbe7   :  { %v1187_v56 = vpop.xlane.xlu0 %470  ;;  %v1189_v57 = vpop.xlane.xlu1 %467 }
 0xbe8   :  { %v485_v59 = vsel %vm1183_vm14, %v1187_v56, %v1128_v45  ;;  %v484_v60 = vsel %vm1183_vm14, %v1189_v57, %v1137_v46  ;;  %v497_v62 = vmax.f32 %v1187_v56, %v892_v8  ;;  %v492_v4 = vmax.f32 %v1189_v57, %v894_v9 }
 0xbeb   :  { %v1199_v61 = vpop.xlane.xlu0 %476  ;;  %v1201_v51 = vpop.xlane.xlu1 %473 }
 0xbec   :  { %v489_v63 = vsub.f32 %v1199_v61, %v1187_v56  ;;  %v496_v0 = vmin.f32 %v1199_v61, %v896_v11  ;;  %v488_v5 = vsub.f32 %v1201_v51, %v1189_v57  ;;  %v491_v6 = vmin.f32 %v1201_v51, %v898_v12 }
 0xbee   :  { %v498_v7 = vsub.f32 %v496_v0, %v497_v62  ;;  %v490_v10 = vmul.f32 %v489_v63, %v488_v5  ;;  %v493_v15 = vsub.f32 %v491_v6, %v492_v4 }
 0xbf0   :  { %v499_v17 = vmax.f32 %v498_v7, 0.0  ;;  %v494_v36 = vmax.f32 %v493_v15, 0.0  ;;  %v503_v38 = vmul.f32 0.5, %v490_v10 }
 0xbf2   :  { %v500_v37 = vmin.f32 %v499_v17, 1.0  ;;  %v495_v58 = vmin.f32 %v494_v36, 1.0  ;;  %v504_v41 = vadd.f32 %v503_v38, %v945_v47 }
 0xbf4   :  { %v501_v39 = vmul.f32 %v500_v37, %v495_v58 }
 0xbf6   :  { %v502_v40 = vmul.f32 1.5, %v501_v39 }
 0xbf8   :  { %vm505_vm1 = vcmp.ge.f32.partialorder %v502_v40, %v504_v41 }
 0xbf9   :  { %vm506_vm2 = vmor %vm505_vm1, %vm1161_vm7  ;;  %vm552_vm1 = vcmp.eq.s32.totalorder %v884_v28, 5 }
 0xbfa   :  { %v507_v44 = vsel %vm506_vm2, -inf, %v433_v1 }
 0xbfb   :  { %v508_v52 = vsel %vm1521_vm6, %v507_v44, -inf }
 0xbfc   :  { %509 = vmax.xlane.f32.xlu1 %v508_v52 }
 0xc89   :  { %v1219_v30 = vpop.xlane.xlu1 %509 }
 0xc8a   :  { %vm512_vm3 = vcmp.eq.f32.partialorder %v507_v44, %v1219_v30  ;;  %vm511_vm2 = vcmp.ge.f32.partialorder %v1219_v30, 0.01 }
 0xc8b   :  { %v513_v20 = vsel %vm512_vm3, %v884_v28, 64  ;;  %vm1247_vm3 = vmand %vm552_vm1, %vm511_vm2 }
 0xc8c   :  { %v514_v23 = vsel %vm1521_vm6, %v513_v20, 2147483647 }
 0xc8d   :  { %v516_v55 = vshra.s32 %v514_v23, 16  ;;  %v515_v21 = vand.u32 65535, %v514_v23 }
 0xc8f   :  { %v518_v31 = vcvt.s32.f32 %v516_v55  ;;  %v517_v63 = vcvt.s32.f32 %v515_v21 }
 0xc91   :  { %519 = vmin.xlane.f32.xlu0 %v518_v31 }
 0xd1e   :  { %v520_v62 = vpop.xlane.xlu0 %519 }
 0xd1f   :  { %vm521_vm9 = vcmp.eq.f32.partialorder %v518_v31, %v520_v62  ;;  %v526_v1 = vcvt.f32.s32 %v520_v62 }
 0xd20   :  { %v522_v0 = vsel %vm521_vm9, %v517_v63, inf }
 0xd21   :  { %523 = vmin.xlane.f32.xlu1 %v522_v0  ;;  %v527_v5 = vshll.u32 %v526_v1, 16 }
 0xdae   :  { %v524_v4 = vpop.xlane.xlu1 %523 }
 0xdaf   :  { %v525_v6 = vcvt.f32.s32 %v524_v4 }
 0xdb1   :  { %v528_v7 = vadd.s32 %v527_v5, %v525_v6 }
 0xdb3   :  { %vm1225_vm11 = vcmp.eq.s32.totalorder %v884_v28, %v528_v7 }
 0xdb4   :  { %v534_v15 = vsel %vm1225_vm11, %v892_v8, 0.0  ;;  %v533_v17 = vsel %vm1225_vm11, %v894_v9, 0.0  ;;  %v536_v58 = vsel %vm1225_vm11, %v896_v11, 0.0  ;;  %v535_v38 = vsel %vm1225_vm11, %v898_v12, 0.0 }
 0xdb5   :  { %v543_v36 = vsel %vm1521_vm6, %v534_v15, 0.0  ;;  %v540_v37 = vsel %vm1521_vm6, %v533_v17, 0.0  ;;  %v549_v39 = vsel %vm1521_vm6, %v536_v58, 0.0  ;;  %v546_v40 = vsel %vm1521_vm6, %v535_v38, 0.0 }
 0xdb6   :  { %544 = vadd.xlane.f32.xlu1 %v543_v36  ;;  %541 = vadd.xlane.f32.xlu0 %v540_v37 }
 0xdba   :  { %550 = vadd.xlane.f32.xlu1 %v549_v39  ;;  %547 = vadd.xlane.f32.xlu0 %v546_v40 }
 0xe43   :  { %v545_v52 = vpop.xlane.xlu1 %544  ;;  %v542_v20 = vpop.xlane.xlu0 %541 }
 0xe44   :  { %v1258_v23 = vsel %vm1247_vm3, %v545_v52, %v485_v59  ;;  %v1267_v55 = vsel %vm1247_vm3, %v542_v20, %v484_v60  ;;  %v571_v62 = vmax.f32 %v545_v52, %v892_v8  ;;  %v566_v59 = vmax.f32 %v542_v20, %v894_v9 }
 0xe47   :  { %v1269_v31 = vpop.xlane.xlu1 %550  ;;  %v1271_v21 = vpop.xlane.xlu0 %547 }
 0xe48   :  { %1552 = vst [vmem:[#allocation11_spill] sm:$0xff] %v1269_v31  ;;  %v563_v45 = vsub.f32 %v1269_v31, %v545_v52  ;;  %v570_v56 = vmin.f32 %v1269_v31, %v896_v11  ;;  %v562_v63 = vsub.f32 %v1271_v21, %v542_v20  ;;  %v565_v46 = vmin.f32 %v1271_v21, %v898_v12 }
 0xe4a   :  { %v572_v57 = vsub.f32 %v570_v56, %v571_v62  ;;  %v564_v60 = vmul.f32 %v563_v45, %v562_v63  ;;  %v567_v0 = vsub.f32 %v565_v46, %v566_v59 }
 0xe4c   :  { %v573_v1 = vmax.f32 %v572_v57, 0.0  ;;  %v568_v4 = vmax.f32 %v567_v0, 0.0  ;;  %v577_v7 = vmul.f32 0.5, %v564_v60 }
 0xe4e   :  { %v574_v5 = vmin.f32 %v573_v1, 1.0  ;;  %v569_v6 = vmin.f32 %v568_v4, 1.0  ;;  %v578_v36 = vadd.f32 %v577_v7, %v945_v47 }
 0xe4f   :  { %v1578_v42 = vld [vmem:[#allocation11_spill] sm:$0xff] }
 0xe50   :  { %v575_v15 = vmul.f32 %v574_v5, %v569_v6 }
 0xe52   :  { %v576_v17 = vmul.f32 1.5, %v575_v15 }
 0xe54   :  { %vm579_vm9 = vcmp.ge.f32.partialorder %v576_v17, %v578_v36 }
 0xe55   :  { %vm580_vm1 = vmor %vm579_vm9, %vm1225_vm11 }
 0xe56   :  { %v581_v37 = vsel %vm580_vm1, -inf, %v507_v44 }
 0xe57   :  { %v582_v58 = vsel %vm1521_vm6, %v581_v37, -inf }
 0xe58   :  { %583 = vmax.xlane.f32.xlu0 %v582_v58 }
 0xee5   :  { %v1285_v38 = vpop.xlane.xlu0 %583 }
 0xee6   :  { %vm586_vm2 = vcmp.eq.f32.partialorder %v581_v37, %v1285_v38  ;;  %vm585_vm1 = vcmp.ge.f32.partialorder %v1285_v38, 0.01 }
 0xee7   :  { %v587_v39 = vsel %vm586_vm2, %v884_v28, 64 }
 0xee8   :  { %v588_v40 = vsel %vm1521_vm6, %v587_v39, 2147483647 }
 0xee9   :  { %v590_v52 = vshra.s32 %v588_v40, 16  ;;  %v589_v62 = vand.u32 65535, %v588_v40 }
 0xeeb   :  { %v592_v20 = vcvt.s32.f32 %v590_v52  ;;  %v591_v56 = vcvt.s32.f32 %v589_v62 }
 0xeed   :  { %593 = vmin.xlane.f32.xlu1 %v592_v20 }
 0xf7a   :  { %v594_v45 = vpop.xlane.xlu1 %593 }
 0xf7b   :  { %vm595_vm8 = vcmp.eq.f32.partialorder %v592_v20, %v594_v45  ;;  %v600_v44 = vcvt.f32.s32 %v594_v45 }
 0xf7c   :  { %v596_v59 = vsel %vm595_vm8, %v591_v56, inf  ;;  %vm626_vm8 = vcmp.eq.s32.totalorder %v884_v28, 6 }
 0xf7d   :  { %597 = vmin.xlane.f32.xlu0 %v596_v59  ;;  %v601_v46 = vshll.u32 %v600_v44, 16  ;;  %vm1313_vm2 = vmand %vm626_vm8, %vm585_vm1 }
0x100a   :  { %v598_v63 = vpop.xlane.xlu0 %597 }
0x100b   :  { %v599_v57 = vcvt.f32.s32 %v598_v63 }
0x100d   :  { %v602_v60 = vadd.s32 %v601_v46, %v599_v57 }
0x100f   :  { %vm1291_vm9 = vcmp.eq.s32.totalorder %v884_v28, %v602_v60 }
0x1010   :  { %v608_v1 = vsel %vm1291_vm9, %v892_v8, 0.0  ;;  %v607_v4 = vsel %vm1291_vm9, %v894_v9, 0.0  ;;  %v610_v7 = vsel %vm1291_vm9, %v896_v11, 0.0  ;;  %v609_v15 = vsel %vm1291_vm9, %v898_v12, 0.0 }
0x1011   :  { %v617_v5 = vsel %vm1521_vm6, %v608_v1, 0.0  ;;  %v614_v6 = vsel %vm1521_vm6, %v607_v4, 0.0  ;;  %v623_v17 = vsel %vm1521_vm6, %v610_v7, 0.0  ;;  %v620_v36 = vsel %vm1521_vm6, %v609_v15, 0.0 }
0x1012   :  { %618 = vadd.xlane.f32.xlu0 %v617_v5  ;;  %615 = vadd.xlane.f32.xlu1 %v614_v6  ;;  %v606_v13 = vsel %vm1291_vm9, %v880_v25, 0.0 }
0x1016   :  { %624 = vadd.xlane.f32.xlu0 %v623_v17  ;;  %621 = vadd.xlane.f32.xlu1 %v620_v36 }
0x109f   :  { %v1317_v39 = vpop.xlane.xlu0 %618  ;;  %v1319_v40 = vpop.xlane.xlu1 %615 }
0x10a0   :  { %v645_v56 = vmax.f32 %v1317_v39, %v892_v8  ;;  %v640_v63 = vmax.f32 %v1319_v40, %v894_v9 }
0x10a3   :  { %v1329_v62 = vpop.xlane.xlu0 %624  ;;  %v1331_v45 = vpop.xlane.xlu1 %621 }
0x10a4   :  { %1557 = vst [vmem:[#allocation12_spill] sm:$0xff] %v1329_v62  ;;  %v637_v59 = vsub.f32 %v1329_v62, %v1317_v39  ;;  %v644_v44 = vmin.f32 %v1329_v62, %v896_v11  ;;  %v636_v46 = vsub.f32 %v1331_v45, %v1319_v40  ;;  %v639_v57 = vmin.f32 %v1331_v45, %v898_v12 }
0x10a6   :  { %v646_v60 = vsub.f32 %v644_v44, %v645_v56  ;;  %v638_v1 = vmul.f32 %v637_v59, %v636_v46  ;;  %v641_v4 = vsub.f32 %v639_v57, %v640_v63  ;;  %v187_v56 = vsel %vm986_vm4, %v886_v29, 0.0 }
0x10a7   :  { %v261_v59 = vsel %vm996_vm5, %v955_v53, %v187_v56  ;;  %v310_v63 = vsel %vm1031_vm12, %v880_v25, 0.0  ;;  %v458_v57 = vsel %vm1161_vm7, %v880_v25, 0.0 }
0x10a8   :  { %v647_v5 = vmax.f32 %v646_v60, 0.0  ;;  %v642_v6 = vmax.f32 %v641_v4, 0.0  ;;  %v651_v17 = vmul.f32 0.5, %v638_v1 }
0x10aa   :  { %v648_v7 = vmin.f32 %v647_v5, 1.0  ;;  %v643_v15 = vmin.f32 %v642_v6, 1.0  ;;  %v652_v20 = vadd.f32 %v651_v17, %v945_v47  ;;  %v335_v47 = vsel %vm1053_vm0, %v1025_v54, %v261_v59 }
0x10ab   :  { %v532_v17 = vsel %vm1225_vm11, %v880_v25, 0.0 }
0x10ac   :  { %v649_v36 = vmul.f32 %v648_v7, %v643_v15 }
0x10ae   :  { %v650_v52 = vmul.f32 1.5, %v649_v36 }
0x10b0   :  { %vm653_vm8 = vcmp.ge.f32.partialorder %v650_v52, %v652_v20  ;;  %v409_v52 = vsel %vm1117_vm13, %v1089_v24, %v335_v47 }
0x10b1   :  { %vm654_vm1 = vmor %vm653_vm8, %vm1291_vm9  ;;  %vm700_vm8 = vcmp.eq.s32.totalorder %v884_v28, 7 }
0x10b2   :  { %v655_v62 = vsel %vm654_vm1, -inf, %v581_v37  ;;  %vm710_vm1 = vcmask 64512  }
0x10b3   :  { %v656_v31 = vsel %vm1521_vm6, %v655_v62, -inf }
0x10b4   :  { %657 = vmax.xlane.f32.xlu1 %v656_v31  ;;  %v483_v31 = vsel %vm1183_vm14, %v1155_v50, %v409_v52  ;;  %vm1560_vm14 = vcmask 523264  }
0x10b5   :  { %v557_v29 = vsel %vm1247_vm3, %v1219_v30, %v483_v31 }
0x10b6   :  { %v631_v53 = vsel %vm1313_vm2, %v1285_v38, %v557_v29  ;;  %v162_v38 = vsel %vm901_vm10, %v880_v25, 0.0 }
0x1141   :  { %v658_v37 = vpop.xlane.xlu1 %657 }
0x1142   :  { %vm659_vm6 = vcmp.ge.f32.partialorder %v658_v37, 0.01  ;;  %vm660_vm5 = vcmp.eq.f32.partialorder %v655_v62, %v658_v37 }
0x1143   :  { %vm1371_vm0 = vmand %vm700_vm8, %vm659_vm6  ;;  %v661_v24 = vsel %vm660_vm5, %v884_v28, 64  ;;  %vm1566_vm8 = vnez %v1541_v14 }
0x1144   :  { %v705_v50 = vsel %vm1371_vm0, %v658_v37, %v631_v53  ;;  %v662_v20 = vsel %vm1560_vm14, %v661_v24, 2147483647  ;;  %vm1561_vm6 = vmmov %vm1560_vm14  ;;  %v384_v0 = vsel %vm1566_vm8, %v880_v25, 0.0  ;;  %vm1574_vm8 = vnez %v1539_v18 }
0x1145   :  { %713 = vst.msk [vmem:[#allocation7 + $0x8] sm:$0xff] %vm710_vm1, %v705_v50  ;;  %v664_v30 = vshra.s32 %v662_v20, 16  ;;  %v167_v62 = vsel %vm1561_vm6, %v162_v38, 0.0  ;;  %vm1562_vm5 = vmmov %vm1561_vm6  ;;  %v663_v4 = vand.u32 65535, %v662_v20 }
0x1146   :  { %v315_v46 = vsel %vm1562_vm5, %v310_v63, 0.0  ;;  %vm1563_vm14 = vmmov %vm1562_vm5 }
0x1147   :  { %v666_v44 = vcvt.s32.f32 %v664_v30  ;;  %v463_v60 = vsel %vm1563_vm14, %v458_v57, 0.0  ;;  %vm1564_vm10 = vmmov %vm1562_vm5  ;;  %v665_v5 = vcvt.s32.f32 %v663_v4 }
0x1148   :  { %v611_v1 = vsel %vm1564_vm10, %v606_v13, 0.0  ;;  %vm1565_vm7 = vmmov %vm1562_vm5  ;;  %v190_v13 = vsel %vm986_vm4, %v927_v27, 0.0 }
0x1149   :  { %667 = vmin.xlane.f32.xlu0 %v666_v44  ;;  %v241_v7 = vsel %vm1565_vm7, %v236_v43, 0.0  ;;  %vm1567_vm9 = vmmov %vm1562_vm5  ;;  %vm1573_vm7 = vnez %v1535_v19  ;;  %v1577_v19 = vsel %vm1313_vm2, %v1317_v39, %v1258_v23  ;;  %v1579_v23 = vld [vmem:[#allocation12_spill] sm:$0xff] }
0x114a   :  { %v389_v15 = vsel %vm1567_vm9, %v384_v0, 0.0  ;;  %vm1568_vm6 = vmmov %vm1562_vm5  ;;  %vm1575_vm9 = vnez %v1547_v33 }
0x114b   :  { %v537_v36 = vsel %vm1568_vm6, %v532_v17, 0.0  ;;  %vm1569_vm14 = vmmov %vm1562_vm5 }
0x114c   :  { %vm1570_vm11 = vmmov %vm1562_vm5 }
0x114d   :  { %168 = vadd.xlane.f32.xlu0 %v167_v62  ;;  %vm1571_vm10 = vmmov %vm1562_vm5 }
0x1151   :  { %316 = vadd.xlane.f32.xlu0 %v315_v46 }
0x1155   :  { %464 = vadd.xlane.f32.xlu0 %v463_v60 }
0x1159   :  { %612 = vadd.xlane.f32.xlu0 %v611_v1  ;;  %v264_v1 = vsel %vm1573_vm7, %v1010_v22, %v190_v13  ;;  %v1576_v22 = vsel %vm1313_vm2, %v1319_v40, %v1267_v55 }
0x115a   :  { %v338_v4 = vsel %vm1574_vm8, %v1071_v35, %v264_v1 }
0x115b   :  { %v412_v43 = vsel %vm1117_vm13, %v1141_v49, %v338_v4 }
0x115c   :  { %v486_v0 = vsel %vm1575_vm9, %v1201_v51, %v412_v43 }
0x115d   :  { %v560_v55 = vsel %vm1247_vm3, %v1271_v21, %v486_v0 }
0x115e   :  { %v634_v16 = vsel %vm1313_vm2, %v1331_v45, %v560_v55 }
0x11d6   :  { %v668_v3 = vpop.xlane.xlu0 %667 }
0x11d7   :  { %vm669_vm12 = vcmp.eq.f32.partialorder %v666_v44, %v668_v3  ;;  %v674_v56 = vcvt.f32.s32 %v668_v3 }
0x11d8   :  { %v670_v6 = vsel %vm669_vm12, %v665_v5, inf  ;;  %vm1572_vm12 = vmmov %vm1562_vm5 }
0x11d9   :  { %671 = vmin.xlane.f32.xlu1 %v670_v6  ;;  %v675_v59 = vshll.u32 %v674_v56, 16 }
0x11dd   :  { %242 = vadd.xlane.f32.xlu1 %v241_v7  ;;  %v191_v7 = vsel %vm986_vm4, %v925_v26, 0.0 }
0x11de   :  { %v265_v49 = vsel %vm1573_vm7, %v1008_v32, %v191_v7 }
0x11df   :  { %v339_v26 = vsel %vm1574_vm8, %v1069_v34, %v265_v49 }
0x11e1   :  { %390 = vadd.xlane.f32.xlu1 %v389_v15  ;;  %v413_v15 = vsel %vm1117_vm13, %v1139_v48, %v339_v26 }
0x11e2   :  { %v487_v34 = vsel %vm1575_vm9, %v1199_v61, %v413_v15 }
0x11e3   :  { %v561_v48 = vsel %vm1247_vm3, %v1578_v42, %v487_v34 }
0x11e4   :  { %v635_v21 = vsel %vm1313_vm2, %v1579_v23, %v561_v48 }
0x11e5   :  { %538 = vadd.xlane.f32.xlu1 %v537_v36 }
0x1266   :  { %v672_v2 = vpop.xlane.xlu1 %671 }
0x1267   :  { %v673_v47 = vcvt.f32.s32 %v672_v2 }
0x1269   :  { %v676_v52 = vadd.s32 %v675_v59, %v673_v47 }
0x126a   :  { %v243_v20 = vpop.xlane.xlu1 %242 }
0x126b   :  { %vm677_vm15 = vcmp.eq.s32.totalorder %v884_v28, %v676_v52 }
0x126c   :  { %v680_v14 = vsel %vm677_vm15, %v880_v25, 0.0  ;;  %v681_v31 = vsel %vm677_vm15, %v894_v9, 0.0  ;;  %v682_v10 = vsel %vm677_vm15, %v892_v8, 0.0  ;;  %v683_v53 = vsel %vm677_vm15, %v898_v12, 0.0  ;;  %v169_v9 = vpop.xlane.xlu0 %168 }
0x126d   :  { %v685_v37 = vsel %vm1562_vm5, %v680_v14, 0.0  ;;  %v688_v29 = vsel %vm1569_vm14, %v681_v31, 0.0  ;;  %v691_v24 = vsel %vm1570_vm11, %v682_v10, 0.0  ;;  %v694_v50 = vsel %vm1571_vm10, %v683_v53, 0.0 }
0x126e   :  { %686 = vadd.xlane.f32.xlu1 %v685_v37  ;;  %689 = vadd.xlane.f32.xlu0 %v688_v29  ;;  %v684_v25 = vsel %vm677_vm15, %v896_v11, 0.0  ;;  %v186_v44 = vsel %vm986_vm4, %v169_v9, 0.0  ;;  %v391_v8 = vpop.xlane.xlu1 %390 }
0x126f   :  { %v697_v28 = vsel %vm1572_vm12, %v684_v25, 0.0  ;;  %v260_v12 = vsel %vm1573_vm7, %v243_v20, %v186_v44 }
0x1270   :  { %v317_v30 = vpop.xlane.xlu0 %316 }
0x1271   :  { %v334_v62 = vsel %vm1574_vm8, %v317_v30, %v260_v12 }
0x1272   :  { %692 = vadd.xlane.f32.xlu1 %v691_v24  ;;  %695 = vadd.xlane.f32.xlu0 %v694_v50  ;;  %v408_v11 = vsel %vm1117_vm13, %v391_v8, %v334_v62  ;;  %v539_v63 = vpop.xlane.xlu1 %538 }
0x1274   :  { %v465_v38 = vpop.xlane.xlu0 %464 }
0x1275   :  { %v482_v57 = vsel %vm1575_vm9, %v465_v38, %v408_v11 }
0x1276   :  { %698 = vadd.xlane.f32.xlu1 %v697_v28  ;;  %v556_v60 = vsel %vm1247_vm3, %v539_v63, %v482_v57 }
0x1278   :  { %v613_v46 = vpop.xlane.xlu0 %612 }
0x1279   :  { %v630_v5 = vsel %vm1313_vm2, %v613_v46, %v556_v60 }
0x12fb   :  { %v687_v3 = vpop.xlane.xlu1 %686  ;;  %v690_v6 = vpop.xlane.xlu0 %689 }
0x12fc   :  { %v704_v27 = vsel %vm1371_vm0, %v687_v3, %v630_v5  ;;  %v706_v35 = vsel %vm1371_vm0, %v690_v6, %v1576_v22 }
0x12fd   :  { %711 = vst.msk [vmem:[#allocation7] sm:$0xff] %vm710_vm1, %v704_v27  ;;  %715 = vst.msk [vmem:[#allocation7 + $0x10] sm:$0xff] %vm710_vm1, %v706_v35 }
0x12ff   :  { %v693_v51 = vpop.xlane.xlu1 %692  ;;  %v696_v40 = vpop.xlane.xlu0 %695 }
0x1300   :  { %v707_v32 = vsel %vm1371_vm0, %v693_v51, %v1577_v19  ;;  %v708_v18 = vsel %vm1371_vm0, %v696_v40, %v634_v16 }
0x1301   :  { %717 = vst.msk [vmem:[#allocation7 + $0x18] sm:$0xff] %vm710_vm1, %v707_v32  ;;  %719 = vst.msk [vmem:[#allocation7 + $0x20] sm:$0xff] %vm710_vm1, %v708_v18 }
0x1303   :  { %v699_v39 = vpop.xlane.xlu1 %698 }
0x1304   :  { %v709_v45 = vsel %vm1371_vm0, %v699_v39, %v635_v21 }
0x1305   :  { %721 = vst.msk [vmem:[#allocation7 + $0x28] sm:$0xff] %vm710_vm1, %v709_v45 }
0x1306   :  { %810 = shalt.err (!%p807_p6)
}
0x1307   :  { %s811_s10 = scalar_lea.hbm %s1517_s2, 768 }
0x1308   :  { %p812_p7 = scmp.ne.s32.totalorder %s1517_s2, %s811_s10  ;;  %p815_p8 = scmp.lt.u32.totalorder %s811_s10, %s1517_s2 }
0x130a   :  { %p817_p9 = pnand %p815_p8, %p812_p7 }
0x130c   :  { %820 = shalt.err (!%p817_p9)
}
0x130d   :  { %733 = dma.vmem_to_hbm [thread:$0]  %s728_s6, 768, %s1517_s2, [#allocation4], %s828_s19, %s828_s19, %s829_s20  }
0x130e   :  { %825 = dma.done.wait [#allocation4], 768  }
0x130f   :  { %826 = vsyncadd [#allocation4], 4294966528 }
0x1310   :  { %737 = vsyncpa [#allocation3], 1 }
0x1311   :  { %738 = vsyncpa [#allocation6], 1 }
0x1312   :  { %739 = vsyncpa [#allocation4], 1 }

</bundles_post_ra>
